<compile_context>
chip_gen: v6e
topology: v6e:2x2x1
jax: 0.10.0
libtpu: 0.0.40
codegen_flags: <defaults>
</compile_context>

<pallas_src>
import functools

import numpy as np
import jax
import jax.numpy as jnp
from jax import lax
from jax.experimental import pallas as pl
from jax.experimental.pallas import tpu as pltpu  # noqa: F401  (imported per convention)

# ---- small, TPU-friendly model dimensions ----------------------------------
B, T, D, V, FF = 2, 8, 128, 256, 256
BT = B * T
RESTRICTED_TOKENS = (3, 17, 42, 99, 200, 255)
R = len(RESTRICTED_TOKENS)

OUT_LANES = 128          # lane-dense packed output width
PROB_LANE = 126          # lane carrying the top-1 probability
IDX_LANE = 127           # lane carrying the top-1 restricted index (as f32)

assert T & (T - 1) == 0, "T must be a power of two (mask uses shifts)"
_T_SHIFT = T.bit_length() - 1


# ---------------------------------------------------------------------------
# Single fused kernel: embedding -> transformer block -> last-position LM head
# -> restricted-token softmax / top-1, packed into one lane-dense output.
# ---------------------------------------------------------------------------
def fused_lm_kernel(tok_ref, restr_ref,
                    wte_ref, wpe_ref, wqkv_ref, wo_ref, w1_ref, w2_ref,
                    ln1g_ref, ln1b_ref, ln2g_ref, ln2b_ref,
                    whead_ref, bhead_ref,
                    out_ref, *, num_restricted):
    # ---- embedding: one-hot(tokens) @ wte  (gather-as-matmul, fully fused) --
    tok = tok_ref[...]                                          # (BT, 1) int32
    vcol = lax.broadcasted_iota(jnp.int32, (BT, V), 1)
    onehot_tok = jnp.where(vcol == tok, 1.0, 0.0).astype(jnp.bfloat16)
    x = jnp.dot(onehot_tok, wte_ref[...],
                preferred_element_type=jnp.float32)             # (BT, D) f32
    x = x + wpe_ref[...]

    # ---- LayerNorm 1 (f32 elementwise) --------------------------------------
    mu = jnp.mean(x, axis=-1, keepdims=True)
    var = jnp.mean((x - mu) ** 2, axis=-1, keepdims=True)
    h = (x - mu) * lax.rsqrt(var + 1e-5) * ln1g_ref[...] + ln1b_ref[...]

    # ---- fused QKV projection: one (BT, D) @ (D, 3D) matmul ----------------
    qkv = jnp.dot(h.astype(jnp.bfloat16), wqkv_ref[...],
                  preferred_element_type=jnp.float32)           # (BT, 3D)
    q = qkv[:, :D]
    k = qkv[:, D:2 * D]
    v = qkv[:, 2 * D:]

    # ---- block-diagonal causal self-attention over the flattened batch -----
    scores = lax.dot_general(q.astype(jnp.bfloat16), k.astype(jnp.bfloat16),
                             (((1,), (1,)), ((), ())),
                             preferred_element_type=jnp.float32)  # (BT, BT)
    scores = scores * (1.0 / jnp.sqrt(jnp.float32(D)))
    row = lax.broadcasted_iota(jnp.int32, (BT, BT), 0)
    col = lax.broadcasted_iota(jnp.int32, (BT, BT), 1)
    same_batch = lax.shift_right_logical(col, _T_SHIFT) == \
        lax.shift_right_logical(row, _T_SHIFT)
    mask = (col <= row) & same_batch
    scores = jnp.where(mask, scores, jnp.float32(-1e30))
    m = jnp.max(scores, axis=-1, keepdims=True)
    e = jnp.exp(scores - m)
    attn = e * pl.reciprocal(jnp.sum(e, axis=-1, keepdims=True), approx=True)
    ctx = jnp.dot(attn.astype(jnp.bfloat16), v.astype(jnp.bfloat16),
                  preferred_element_type=jnp.float32)
    x = x + jnp.dot(ctx.astype(jnp.bfloat16), wo_ref[...],
                    preferred_element_type=jnp.float32)

    # ---- LayerNorm 2 + MLP ---------------------------------------------------
    mu2 = jnp.mean(x, axis=-1, keepdims=True)
    var2 = jnp.mean((x - mu2) ** 2, axis=-1, keepdims=True)
    h2 = (x - mu2) * lax.rsqrt(var2 + 1e-5) * ln2g_ref[...] + ln2b_ref[...]
    ff = jax.nn.gelu(jnp.dot(h2.astype(jnp.bfloat16), w1_ref[...],
                             preferred_element_type=jnp.float32))
    x = x + jnp.dot(ff.astype(jnp.bfloat16), w2_ref[...],
                    preferred_element_type=jnp.float32)         # (BT, D)

    # ---- LM head: last position of each sequence only (label_length == 1) --
    # Row-selection matmul (exact in f32): sel[b, j] = 1 iff j == b*T + (T-1).
    b_row = lax.broadcasted_iota(jnp.int32, (B, BT), 0)
    bt_col = lax.broadcasted_iota(jnp.int32, (B, BT), 1)
    sel = jnp.where(bt_col == b_row * T + (T - 1), 1.0, 0.0)    # (B, BT) f32
    x_last = jnp.dot(sel, x, preferred_element_type=jnp.float32)  # (B, D)
    logits = jnp.dot(x_last.astype(jnp.bfloat16), whead_ref[...],
                     preferred_element_type=jnp.float32) + bhead_ref[...]  # (B, V)

    # ---- restricted-token softmax + top-1 -----------------------------------
    lm = jnp.max(logits, axis=-1, keepdims=True)
    le = jnp.exp(logits - lm)
    probs = le * pl.reciprocal(jnp.sum(le, axis=-1, keepdims=True), approx=True)

    # (V, OUT_LANES) one-hot selector built in-kernel from restricted ids
    # (ids padded with -1 never match a vocab row -> padded lanes stay 0).
    rid = restr_ref[...]                                        # (1, OUT_LANES)
    vrow = lax.broadcasted_iota(jnp.int32, (V, OUT_LANES), 0)
    onehot_r = jnp.where(vrow == rid, 1.0, 0.0)                 # f32
    rd_pad = jnp.dot(probs, onehot_r,
                     preferred_element_type=jnp.float32)        # (B, OUT_LANES)

    lane = lax.broadcasted_iota(jnp.int32, (B, OUT_LANES), 1)
    valid = lane < num_restricted
    rd_top = jnp.where(valid, rd_pad, jnp.float32(-1.0))
    top = jnp.max(rd_top, axis=-1, keepdims=True)               # (B, 1)
    idx = jnp.min(jnp.where(rd_top >= top, lane, jnp.int32(2 ** 30)),
                  axis=-1, keepdims=True)                       # (B, 1)

    # Lane-dense packed output: [0:R] = restricted dist, lane 126 = top prob,
    # lane 127 = argmax index (exact small int stored as f32).
    out = jnp.where(valid, rd_pad, jnp.float32(0.0))
    out = jnp.where(lane == PROB_LANE, top, out)
    out = jnp.where(lane == IDX_LANE, idx.astype(jnp.float32), out)
    out_ref[...] = out


@functools.lru_cache(maxsize=8)
def _fused_call(num_restricted):
    kernel = functools.partial(fused_lm_kernel, num_restricted=num_restricted)
    # Gridless call: every operand is a full-array VMEM block (weights are
    # resident for the whole kernel, no pipeline / per-step overhead).
    call = pl.pallas_call(
        kernel,
        out_shape=jax.ShapeDtypeStruct((B, OUT_LANES), jnp.float32),
    )
    return jax.jit(call)


@functools.lru_cache(maxsize=8)
def _restricted_ids_padded(restricted_token):
    ids = np.full((1, OUT_LANES), -1, dtype=np.int32)
    ids[0, :len(restricted_token)] = np.asarray(restricted_token, dtype=np.int32)
    return jnp.asarray(ids)


# ---------------------------------------------------------------------------
# Parameter construction (deterministic, synthetic).  Matmul weights in bf16.
# ---------------------------------------------------------------------------
def init_params(key):
    ks = jax.random.split(key, 9)

    def nrm(k, shape, scale=0.02):
        return scale * jax.random.normal(k, shape, jnp.float32)

    wq = nrm(ks[2], (D, D))
    wk = nrm(ks[3], (D, D))
    wv = nrm(ks[4], (D, D))
    wpe = nrm(ks[1], (T, D))
    return {
        "wte": nrm(ks[0], (V, D)).astype(jnp.bfloat16),
        "wpe_bt": jnp.tile(wpe, (B, 1)),                       # (BT, D) f32
        "w_qkv": jnp.concatenate([wq, wk, wv], axis=1).astype(jnp.bfloat16),
        "wo": nrm(ks[5], (D, D)).astype(jnp.bfloat16),
        "w1": nrm(ks[6], (D, FF)).astype(jnp.bfloat16),
        "w2": nrm(ks[7], (FF, D)).astype(jnp.bfloat16),
        "ln1_g": jnp.ones((1, D), jnp.float32),
        "ln1_b": jnp.zeros((1, D), jnp.float32),
        "ln2_g": jnp.ones((1, D), jnp.float32),
        "ln2_b": jnp.zeros((1, D), jnp.float32),
        "w_head": nrm(ks[8], (D, V)).astype(jnp.bfloat16),
        "b_head": jnp.zeros((1, V), jnp.float32),
    }


# ---------------------------------------------------------------------------
# forward (mirrors ImmutableLM.forward, batch path, no generation).
# ---------------------------------------------------------------------------
def immutable_lm_forward(data, restricted_token, params, label_length=1):
    if label_length != 1:
        # TODO(synk): fused LM-head/restricted path only supports label_length == 1.
        raise NotImplementedError("fused kernel supports label_length == 1 only")

    input_sequence = data["input_sequence"]
    if input_sequence.ndim == 3:
        input_sequence = jnp.squeeze(input_sequence, axis=0)

    restricted_token = tuple(int(t) for t in restricted_token)
    num_r = len(restricted_token)
    assert 0 < num_r <= PROB_LANE

    tok_flat = jnp.reshape(input_sequence.astype(jnp.int32), (BT, 1))
    rid = _restricted_ids_padded(restricted_token)

    p = params
    out = _fused_call(num_r)(
        tok_flat, rid,
        p["wte"], p["wpe_bt"], p["w_qkv"], p["wo"], p["w1"], p["w2"],
        p["ln1_g"], p["ln1_b"], p["ln2_g"], p["ln2_b"],
        p["w_head"], p["b_head"])
    out = jax.block_until_ready(out)

    # Single device->host transfer; everything host-side from here.
    out_np = np.asarray(jax.device_get(out))                   # (B, OUT_LANES)
    prob_dist = out_np[:, :num_r]                              # (B, R)
    pred_prob = out_np[:, PROB_LANE]
    pred_idx = out_np[:, IDX_LANE].astype(np.int32)

    prediction = [restricted_token[int(i)] for i in pred_idx]
    prediction_prob = [float(pp) for pp in pred_prob]

    # TODO(synk): tokenizer.decode / HF checkpoint loading have no Pallas
    # equivalent; prediction_text is returned as the raw token id.
    return {
        "prediction_token": prediction,
        "prediction_text": prediction,
        "prediction_prob": prediction_prob,
        "prediction_dist": prob_dist,
        "label": data.get("label"),
        "prompt_examples": data.get("train_metadata"),
        "prompt_sequence_text": data.get("raw_sequence"),
        "prompt_sequence_index": data["input_sequence"],
    }


if __name__ == "__main__":
    key = jax.random.PRNGKey(0)
    k_par, k_tok = jax.random.split(key)
    params = init_params(k_par)

    tokens = jax.random.randint(k_tok, (B, T), 0, V, dtype=jnp.int32)
    data = {
        "input_sequence": tokens,
        "label": [0, 1],
        "train_metadata": None,
        "raw_sequence": None,
    }

    out = immutable_lm_forward(data, RESTRICTED_TOKENS, params, label_length=1)
    dist = jax.block_until_ready(out["prediction_dist"])

    assert dist.shape == (B, R)
    assert bool(np.all(np.isfinite(dist)))
    assert np.all(dist >= 0.0)
    assert len(out["prediction_token"]) == B
    assert all(t in RESTRICTED_TOKENS for t in out["prediction_token"])
    assert all(0.0 <= p <= 1.0 for p in out["prediction_prob"])
    print("KERNEL_OK")
</pallas_src>

<mosaic_0001>
module attributes {stable_mosaic.version = 11 : i64} {
  func.func @fused_lm_kernel(%arg0: memref<16x1xi32, #tpu.memory_space<vmem>>, %arg1: memref<1x128xi32, #tpu.memory_space<vmem>>, %arg2: memref<256x128xbf16, #tpu.memory_space<vmem>>, %arg3: memref<16x128xf32, #tpu.memory_space<vmem>>, %arg4: memref<128x384xbf16, #tpu.memory_space<vmem>>, %arg5: memref<128x128xbf16, #tpu.memory_space<vmem>>, %arg6: memref<128x256xbf16, #tpu.memory_space<vmem>>, %arg7: memref<256x128xbf16, #tpu.memory_space<vmem>>, %arg8: memref<1x128xf32, #tpu.memory_space<vmem>>, %arg9: memref<1x128xf32, #tpu.memory_space<vmem>>, %arg10: memref<1x128xf32, #tpu.memory_space<vmem>>, %arg11: memref<1x128xf32, #tpu.memory_space<vmem>>, %arg12: memref<128x256xbf16, #tpu.memory_space<vmem>>, %arg13: memref<1x256xf32, #tpu.memory_space<vmem>>, %arg14: memref<2x128xf32, #tpu.memory_space<vmem>>) attributes {dimension_semantics = [], scalar_prefetch = 0 : i64, scratch_operands = 0 : i64, tpu.core_type = #tpu.core_type<tc>} {
    %c0 = arith.constant 0 : index
    %c0_0 = arith.constant 0 : index
    %0 = vector.load %arg0[%c0, %c0_0] : memref<16x1xi32, #tpu.memory_space<vmem>>, vector<16x1xi32>
    %1 = tpu.iota {dimensions = array<i32: 1>} : vector<16x256xi32>
    %2 = vector.broadcast %0 : vector<16x1xi32> to vector<16x256xi32>
    %3 = arith.cmpi eq, %1, %2 : vector<16x256xi32>
    %cst = arith.constant 1.000000e+00 : f32
    %cst_1 = arith.constant 0.000000e+00 : f32
    %4 = vector.broadcast %cst : f32 to vector<16x256xf32>
    %5 = vector.broadcast %cst_1 : f32 to vector<16x256xf32>
    %6 = arith.select %3, %4, %5 : vector<16x256xi1>, vector<16x256xf32>
    %7 = arith.truncf %6 : vector<16x256xf32> to vector<16x256xbf16>
    %c0_2 = arith.constant 0 : index
    %c0_3 = arith.constant 0 : index
    %8 = vector.load %arg2[%c0_2, %c0_3] : memref<256x128xbf16, #tpu.memory_space<vmem>>, vector<256x128xbf16>
    %cst_4 = arith.constant dense<0.000000e+00> : vector<16x128xf32>
    %9 = tpu.matmul %7, %8, %cst_4 {dimension_numbers = #tpu.dot_dimension_numbers<[1], [0], [0], [1], [0, 0, 1, 1], [], []>} : vector<16x256xbf16>, vector<256x128xbf16>, vector<16x128xf32> -> vector<16x128xf32>
    %c0_5 = arith.constant 0 : index
    %c0_6 = arith.constant 0 : index
    %10 = vector.load %arg3[%c0_5, %c0_6] : memref<16x128xf32, #tpu.memory_space<vmem>>, vector<16x128xf32>
    %11 = arith.addf %9, %10 : vector<16x128xf32>
    %cst_7 = arith.constant dense<0.000000e+00> : vector<16xf32>
    %12 = vector.multi_reduction <add>, %11, %cst_7 [1] : vector<16x128xf32> to vector<16xf32>
    %13 = vector.shape_cast %12 : vector<16xf32> to vector<16x1xf32>
    %cst_8 = arith.constant 1.280000e+02 : f32
    %14 = vector.broadcast %cst_8 : f32 to vector<16x1xf32>
    %15 = arith.divf %13, %14 : vector<16x1xf32>
    %16 = vector.broadcast %15 : vector<16x1xf32> to vector<16x128xf32>
    %17 = arith.subf %11, %16 : vector<16x128xf32>
    %18 = arith.mulf %17, %17 : vector<16x128xf32>
    %cst_9 = arith.constant dense<0.000000e+00> : vector<16xf32>
    %19 = vector.multi_reduction <add>, %18, %cst_9 [1] : vector<16x128xf32> to vector<16xf32>
    %20 = vector.shape_cast %19 : vector<16xf32> to vector<16x1xf32>
    %cst_10 = arith.constant 1.280000e+02 : f32
    %21 = vector.broadcast %cst_10 : f32 to vector<16x1xf32>
    %22 = arith.divf %20, %21 : vector<16x1xf32>
    %23 = vector.broadcast %15 : vector<16x1xf32> to vector<16x128xf32>
    %24 = arith.subf %11, %23 : vector<16x128xf32>
    %cst_11 = arith.constant 9.99999974E-6 : f32
    %25 = vector.broadcast %cst_11 : f32 to vector<16x1xf32>
    %26 = arith.addf %22, %25 : vector<16x1xf32>
    %27 = math.rsqrt %26 : vector<16x1xf32>
    %28 = vector.broadcast %27 : vector<16x1xf32> to vector<16x128xf32>
    %29 = arith.mulf %24, %28 : vector<16x128xf32>
    %c0_12 = arith.constant 0 : index
    %c0_13 = arith.constant 0 : index
    %30 = vector.load %arg8[%c0_12, %c0_13] : memref<1x128xf32, #tpu.memory_space<vmem>>, vector<1x128xf32>
    %31 = vector.broadcast %30 : vector<1x128xf32> to vector<16x128xf32>
    %32 = arith.mulf %29, %31 : vector<16x128xf32>
    %c0_14 = arith.constant 0 : index
    %c0_15 = arith.constant 0 : index
    %33 = vector.load %arg9[%c0_14, %c0_15] : memref<1x128xf32, #tpu.memory_space<vmem>>, vector<1x128xf32>
    %34 = vector.broadcast %33 : vector<1x128xf32> to vector<16x128xf32>
    %35 = arith.addf %32, %34 : vector<16x128xf32>
    %36 = arith.truncf %35 : vector<16x128xf32> to vector<16x128xbf16>
    %c0_16 = arith.constant 0 : index
    %c0_17 = arith.constant 0 : index
    %37 = vector.load %arg4[%c0_16, %c0_17] : memref<128x384xbf16, #tpu.memory_space<vmem>>, vector<128x384xbf16>
    %cst_18 = arith.constant dense<0.000000e+00> : vector<16x384xf32>
    %38 = tpu.matmul %36, %37, %cst_18 {dimension_numbers = #tpu.dot_dimension_numbers<[1], [0], [0], [1], [0, 0, 1, 1], [], []>} : vector<16x128xbf16>, vector<128x384xbf16>, vector<16x384xf32> -> vector<16x384xf32>
    %39 = vector.extract_strided_slice %38 {offsets = [0, 0], sizes = [16, 128], strides = [1, 1]} : vector<16x384xf32> to vector<16x128xf32>
    %40 = vector.extract_strided_slice %38 {offsets = [0, 128], sizes = [16, 128], strides = [1, 1]} : vector<16x384xf32> to vector<16x128xf32>
    %41 = vector.extract_strided_slice %38 {offsets = [0, 256], sizes = [16, 128], strides = [1, 1]} : vector<16x384xf32> to vector<16x128xf32>
    %42 = arith.truncf %39 : vector<16x128xf32> to vector<16x128xbf16>
    %43 = arith.truncf %40 : vector<16x128xf32> to vector<16x128xbf16>
    %cst_19 = arith.constant dense<0.000000e+00> : vector<16x16xf32>
    %44 = tpu.matmul %42, %43, %cst_19 {dimension_numbers = #tpu.dot_dimension_numbers<[1], [1], [0], [0], [0, 0, 1, 0], [], []>} : vector<16x128xbf16>, vector<16x128xbf16>, vector<16x16xf32> -> vector<16x16xf32>
    %cst_20 = arith.constant 1.280000e+02 : f32
    %45 = math.sqrt %cst_20 : f32
    %cst_21 = arith.constant 1.000000e+00 : f32
    %46 = arith.divf %cst_21, %45 : f32
    %47 = vector.broadcast %46 : f32 to vector<16x16xf32>
    %48 = arith.mulf %44, %47 : vector<16x16xf32>
    %49 = tpu.iota {dimensions = array<i32: 0>} : vector<16x16xi32>
    %50 = tpu.iota {dimensions = array<i32: 1>} : vector<16x16xi32>
    %c3_i32 = arith.constant 3 : i32
    %51 = vector.broadcast %c3_i32 : i32 to vector<16x16xi32>
    %52 = arith.shrui %50, %51 : vector<16x16xi32>
    %c3_i32_22 = arith.constant 3 : i32
    %53 = vector.broadcast %c3_i32_22 : i32 to vector<16x16xi32>
    %54 = arith.shrui %49, %53 : vector<16x16xi32>
    %55 = arith.cmpi eq, %52, %54 : vector<16x16xi32>
    %56 = arith.cmpi sle, %50, %49 : vector<16x16xi32>
    %57 = arith.andi %56, %55 : vector<16x16xi1>
    %cst_23 = arith.constant -1.000000e+30 : f32
    %58 = vector.broadcast %cst_23 : f32 to vector<16x16xf32>
    %59 = arith.select %57, %48, %58 : vector<16x16xi1>, vector<16x16xf32>
    %cst_24 = arith.constant dense<0xFF800000> : vector<16xf32>
    %60 = vector.multi_reduction <maximumf>, %59, %cst_24 [1] : vector<16x16xf32> to vector<16xf32>
    %61 = vector.shape_cast %60 : vector<16xf32> to vector<16x1xf32>
    %62 = vector.broadcast %61 : vector<16x1xf32> to vector<16x16xf32>
    %63 = arith.subf %59, %62 : vector<16x16xf32>
    %64 = math.exp %63 : vector<16x16xf32>
    %cst_25 = arith.constant dense<0.000000e+00> : vector<16xf32>
    %65 = vector.multi_reduction <add>, %64, %cst_25 [1] : vector<16x16xf32> to vector<16xf32>
    %66 = vector.shape_cast %65 : vector<16xf32> to vector<16x1xf32>
    %67 = tpu.reciprocal %66 {approx = true} : vector<16x1xf32> -> vector<16x1xf32>
    %68 = vector.broadcast %67 : vector<16x1xf32> to vector<16x16xf32>
    %69 = arith.mulf %64, %68 : vector<16x16xf32>
    %70 = arith.truncf %69 : vector<16x16xf32> to vector<16x16xbf16>
    %71 = arith.truncf %41 : vector<16x128xf32> to vector<16x128xbf16>
    %cst_26 = arith.constant dense<0.000000e+00> : vector<16x128xf32>
    %72 = tpu.matmul %70, %71, %cst_26 {dimension_numbers = #tpu.dot_dimension_numbers<[1], [0], [0], [1], [0, 0, 1, 1], [], []>} : vector<16x16xbf16>, vector<16x128xbf16>, vector<16x128xf32> -> vector<16x128xf32>
    %73 = arith.truncf %72 : vector<16x128xf32> to vector<16x128xbf16>
    %c0_27 = arith.constant 0 : index
    %c0_28 = arith.constant 0 : index
    %74 = vector.load %arg5[%c0_27, %c0_28] : memref<128x128xbf16, #tpu.memory_space<vmem>>, vector<128x128xbf16>
    %cst_29 = arith.constant dense<0.000000e+00> : vector<16x128xf32>
    %75 = tpu.matmul %73, %74, %cst_29 {dimension_numbers = #tpu.dot_dimension_numbers<[1], [0], [0], [1], [0, 0, 1, 1], [], []>} : vector<16x128xbf16>, vector<128x128xbf16>, vector<16x128xf32> -> vector<16x128xf32>
    %76 = arith.addf %11, %75 : vector<16x128xf32>
    %cst_30 = arith.constant dense<0.000000e+00> : vector<16xf32>
    %77 = vector.multi_reduction <add>, %76, %cst_30 [1] : vector<16x128xf32> to vector<16xf32>
    %78 = vector.shape_cast %77 : vector<16xf32> to vector<16x1xf32>
    %cst_31 = arith.constant 1.280000e+02 : f32
    %79 = vector.broadcast %cst_31 : f32 to vector<16x1xf32>
    %80 = arith.divf %78, %79 : vector<16x1xf32>
    %81 = vector.broadcast %80 : vector<16x1xf32> to vector<16x128xf32>
    %82 = arith.subf %76, %81 : vector<16x128xf32>
    %83 = arith.mulf %82, %82 : vector<16x128xf32>
    %cst_32 = arith.constant dense<0.000000e+00> : vector<16xf32>
    %84 = vector.multi_reduction <add>, %83, %cst_32 [1] : vector<16x128xf32> to vector<16xf32>
    %85 = vector.shape_cast %84 : vector<16xf32> to vector<16x1xf32>
    %cst_33 = arith.constant 1.280000e+02 : f32
    %86 = vector.broadcast %cst_33 : f32 to vector<16x1xf32>
    %87 = arith.divf %85, %86 : vector<16x1xf32>
    %88 = vector.broadcast %80 : vector<16x1xf32> to vector<16x128xf32>
    %89 = arith.subf %76, %88 : vector<16x128xf32>
    %cst_34 = arith.constant 9.99999974E-6 : f32
    %90 = vector.broadcast %cst_34 : f32 to vector<16x1xf32>
    %91 = arith.addf %87, %90 : vector<16x1xf32>
    %92 = math.rsqrt %91 : vector<16x1xf32>
    %93 = vector.broadcast %92 : vector<16x1xf32> to vector<16x128xf32>
    %94 = arith.mulf %89, %93 : vector<16x128xf32>
    %c0_35 = arith.constant 0 : index
    %c0_36 = arith.constant 0 : index
    %95 = vector.load %arg10[%c0_35, %c0_36] : memref<1x128xf32, #tpu.memory_space<vmem>>, vector<1x128xf32>
    %96 = vector.broadcast %95 : vector<1x128xf32> to vector<16x128xf32>
    %97 = arith.mulf %94, %96 : vector<16x128xf32>
    %c0_37 = arith.constant 0 : index
    %c0_38 = arith.constant 0 : index
    %98 = vector.load %arg11[%c0_37, %c0_38] : memref<1x128xf32, #tpu.memory_space<vmem>>, vector<1x128xf32>
    %99 = vector.broadcast %98 : vector<1x128xf32> to vector<16x128xf32>
    %100 = arith.addf %97, %99 : vector<16x128xf32>
    %101 = arith.truncf %100 : vector<16x128xf32> to vector<16x128xbf16>
    %c0_39 = arith.constant 0 : index
    %c0_40 = arith.constant 0 : index
    %102 = vector.load %arg6[%c0_39, %c0_40] : memref<128x256xbf16, #tpu.memory_space<vmem>>, vector<128x256xbf16>
    %cst_41 = arith.constant dense<0.000000e+00> : vector<16x256xf32>
    %103 = tpu.matmul %101, %102, %cst_41 {dimension_numbers = #tpu.dot_dimension_numbers<[1], [0], [0], [1], [0, 0, 1, 1], [], []>} : vector<16x128xbf16>, vector<128x256xbf16>, vector<16x256xf32> -> vector<16x256xf32>
    %104 = arith.mulf %103, %103 : vector<16x256xf32>
    %105 = arith.mulf %103, %104 : vector<16x256xf32>
    %cst_42 = arith.constant 4.471500e-02 : f32
    %106 = vector.broadcast %cst_42 : f32 to vector<16x256xf32>
    %107 = arith.mulf %106, %105 : vector<16x256xf32>
    %108 = arith.addf %103, %107 : vector<16x256xf32>
    %cst_43 = arith.constant 0.797884583 : f32
    %109 = vector.broadcast %cst_43 : f32 to vector<16x256xf32>
    %110 = arith.mulf %109, %108 : vector<16x256xf32>
    %111 = math.tanh %110 : vector<16x256xf32>
    %cst_44 = arith.constant 1.000000e+00 : f32
    %112 = vector.broadcast %cst_44 : f32 to vector<16x256xf32>
    %113 = arith.addf %112, %111 : vector<16x256xf32>
    %cst_45 = arith.constant 5.000000e-01 : f32
    %114 = vector.broadcast %cst_45 : f32 to vector<16x256xf32>
    %115 = arith.mulf %114, %113 : vector<16x256xf32>
    %116 = arith.mulf %103, %115 : vector<16x256xf32>
    %117 = arith.truncf %116 : vector<16x256xf32> to vector<16x256xbf16>
    %c0_46 = arith.constant 0 : index
    %c0_47 = arith.constant 0 : index
    %118 = vector.load %arg7[%c0_46, %c0_47] : memref<256x128xbf16, #tpu.memory_space<vmem>>, vector<256x128xbf16>
    %cst_48 = arith.constant dense<0.000000e+00> : vector<16x128xf32>
    %119 = tpu.matmul %117, %118, %cst_48 {dimension_numbers = #tpu.dot_dimension_numbers<[1], [0], [0], [1], [0, 0, 1, 1], [], []>} : vector<16x256xbf16>, vector<256x128xbf16>, vector<16x128xf32> -> vector<16x128xf32>
    %120 = arith.addf %76, %119 : vector<16x128xf32>
    %121 = tpu.iota {dimensions = array<i32: 0>} : vector<2x16xi32>
    %122 = tpu.iota {dimensions = array<i32: 1>} : vector<2x16xi32>
    %c8_i32 = arith.constant 8 : i32
    %123 = vector.broadcast %c8_i32 : i32 to vector<2x16xi32>
    %124 = arith.muli %121, %123 : vector<2x16xi32>
    %c7_i32 = arith.constant 7 : i32
    %125 = vector.broadcast %c7_i32 : i32 to vector<2x16xi32>
    %126 = arith.addi %124, %125 : vector<2x16xi32>
    %127 = arith.cmpi eq, %122, %126 : vector<2x16xi32>
    %cst_49 = arith.constant 1.000000e+00 : f32
    %cst_50 = arith.constant 0.000000e+00 : f32
    %128 = vector.broadcast %cst_49 : f32 to vector<2x16xf32>
    %129 = vector.broadcast %cst_50 : f32 to vector<2x16xf32>
    %130 = arith.select %127, %128, %129 : vector<2x16xi1>, vector<2x16xf32>
    %cst_51 = arith.constant dense<0.000000e+00> : vector<2x128xf32>
    %131 = tpu.matmul %130, %120, %cst_51 {dimension_numbers = #tpu.dot_dimension_numbers<[1], [0], [0], [1], [0, 0, 1, 1], [], []>} : vector<2x16xf32>, vector<16x128xf32>, vector<2x128xf32> -> vector<2x128xf32>
    %132 = arith.truncf %131 : vector<2x128xf32> to vector<2x128xbf16>
    %c0_52 = arith.constant 0 : index
    %c0_53 = arith.constant 0 : index
    %133 = vector.load %arg12[%c0_52, %c0_53] : memref<128x256xbf16, #tpu.memory_space<vmem>>, vector<128x256xbf16>
    %cst_54 = arith.constant dense<0.000000e+00> : vector<2x256xf32>
    %134 = tpu.matmul %132, %133, %cst_54 {dimension_numbers = #tpu.dot_dimension_numbers<[1], [0], [0], [1], [0, 0, 1, 1], [], []>} : vector<2x128xbf16>, vector<128x256xbf16>, vector<2x256xf32> -> vector<2x256xf32>
    %c0_55 = arith.constant 0 : index
    %c0_56 = arith.constant 0 : index
    %135 = vector.load %arg13[%c0_55, %c0_56] : memref<1x256xf32, #tpu.memory_space<vmem>>, vector<1x256xf32>
    %136 = vector.broadcast %135 : vector<1x256xf32> to vector<2x256xf32>
    %137 = arith.addf %134, %136 : vector<2x256xf32>
    %cst_57 = arith.constant dense<0xFF800000> : vector<2xf32>
    %138 = vector.multi_reduction <maximumf>, %137, %cst_57 [1] : vector<2x256xf32> to vector<2xf32>
    %139 = vector.shape_cast %138 : vector<2xf32> to vector<2x1xf32>
    %140 = vector.broadcast %139 : vector<2x1xf32> to vector<2x256xf32>
    %141 = arith.subf %137, %140 : vector<2x256xf32>
    %142 = math.exp %141 : vector<2x256xf32>
    %cst_58 = arith.constant dense<0.000000e+00> : vector<2xf32>
    %143 = vector.multi_reduction <add>, %142, %cst_58 [1] : vector<2x256xf32> to vector<2xf32>
    %144 = vector.shape_cast %143 : vector<2xf32> to vector<2x1xf32>
    %145 = tpu.reciprocal %144 {approx = true} : vector<2x1xf32> -> vector<2x1xf32>
    %146 = vector.broadcast %145 : vector<2x1xf32> to vector<2x256xf32>
    %147 = arith.mulf %142, %146 : vector<2x256xf32>
    %c0_59 = arith.constant 0 : index
    %c0_60 = arith.constant 0 : index
    %148 = vector.load %arg1[%c0_59, %c0_60] : memref<1x128xi32, #tpu.memory_space<vmem>>, vector<1x128xi32>
    %149 = tpu.iota {dimensions = array<i32: 0>} : vector<256x128xi32>
    %150 = vector.broadcast %148 : vector<1x128xi32> to vector<256x128xi32>
    %151 = arith.cmpi eq, %149, %150 : vector<256x128xi32>
    %cst_61 = arith.constant 1.000000e+00 : f32
    %cst_62 = arith.constant 0.000000e+00 : f32
    %152 = vector.broadcast %cst_61 : f32 to vector<256x128xf32>
    %153 = vector.broadcast %cst_62 : f32 to vector<256x128xf32>
    %154 = arith.select %151, %152, %153 : vector<256x128xi1>, vector<256x128xf32>
    %cst_63 = arith.constant dense<0.000000e+00> : vector<2x128xf32>
    %155 = tpu.matmul %147, %154, %cst_63 {dimension_numbers = #tpu.dot_dimension_numbers<[1], [0], [0], [1], [0, 0, 1, 1], [], []>} : vector<2x256xf32>, vector<256x128xf32>, vector<2x128xf32> -> vector<2x128xf32>
    %156 = tpu.iota {dimensions = array<i32: 1>} : vector<2x128xi32>
    %c6_i32 = arith.constant 6 : i32
    %157 = vector.broadcast %c6_i32 : i32 to vector<2x128xi32>
    %158 = arith.cmpi slt, %156, %157 : vector<2x128xi32>
    %cst_64 = arith.constant -1.000000e+00 : f32
    %159 = vector.broadcast %cst_64 : f32 to vector<2x128xf32>
    %160 = arith.select %158, %155, %159 : vector<2x128xi1>, vector<2x128xf32>
    %cst_65 = arith.constant dense<0xFF800000> : vector<2xf32>
    %161 = vector.multi_reduction <maximumf>, %160, %cst_65 [1] : vector<2x128xf32> to vector<2xf32>
    %162 = vector.shape_cast %161 : vector<2xf32> to vector<2x1xf32>
    %163 = vector.broadcast %162 : vector<2x1xf32> to vector<2x128xf32>
    %164 = arith.cmpf oge, %160, %163 : vector<2x128xf32>
    %c1073741824_i32 = arith.constant 1073741824 : i32
    %165 = vector.broadcast %c1073741824_i32 : i32 to vector<2x128xi32>
    %166 = arith.select %164, %156, %165 : vector<2x128xi1>, vector<2x128xi32>
    %cst_66 = arith.constant dense<2147483647> : vector<2xi32>
    %167 = vector.multi_reduction <minsi>, %166, %cst_66 [1] : vector<2x128xi32> to vector<2xi32>
    %168 = vector.shape_cast %167 : vector<2xi32> to vector<2x1xi32>
    %cst_67 = arith.constant 0.000000e+00 : f32
    %169 = vector.broadcast %cst_67 : f32 to vector<2x128xf32>
    %170 = arith.select %158, %155, %169 : vector<2x128xi1>, vector<2x128xf32>
    %c126_i32 = arith.constant 126 : i32
    %171 = vector.broadcast %c126_i32 : i32 to vector<2x128xi32>
    %172 = arith.cmpi eq, %156, %171 : vector<2x128xi32>
    %173 = vector.shape_cast %162 : vector<2x1xf32> to vector<2x1xf32>
    %174 = vector.broadcast %173 : vector<2x1xf32> to vector<2x128xf32>
    %175 = arith.select %172, %174, %170 : vector<2x128xi1>, vector<2x128xf32>
    %c127_i32 = arith.constant 127 : i32
    %176 = vector.broadcast %c127_i32 : i32 to vector<2x128xi32>
    %177 = arith.cmpi eq, %156, %176 : vector<2x128xi32>
    %178 = arith.sitofp %168 : vector<2x1xi32> to vector<2x1xf32>
    %179 = vector.shape_cast %178 : vector<2x1xf32> to vector<2x1xf32>
    %180 = vector.broadcast %179 : vector<2x1xf32> to vector<2x128xf32>
    %181 = arith.select %177, %180, %175 : vector<2x128xi1>, vector<2x128xf32>
    %c0_68 = arith.constant 0 : index
    %c0_69 = arith.constant 0 : index
    %182 = vector.load %arg14[%c0_68, %c0_69] : memref<2x128xf32, #tpu.memory_space<vmem>>, vector<2x128xf32>
    tpu.vector_store %arg14[%c0_68, %c0_69], %181 {strides = array<i32>} : memref<2x128xf32, #tpu.memory_space<vmem>>, vector<2x128xf32>,
    return
  }
}

</mosaic_0001>

<bundles_post_ra>
// kernel: tpu_custom_call.1
= control target key start
LH: loop header
LB: loop body
LE: loop exit
PB: predicated region body
PF: predicated region fallthrough
CT: control target
= control target key end

     0   :  { %19 = vsyncpa [#allocation3], 0  ;;  %s2670_s0 = inlined_call_operand.vmem [shape: s32[16,1], index: 0, kind: input, shape index: {}]   ;;  %s2671_s1 = inlined_call_operand.vmem [shape: s32[1,128], index: 1, kind: input, shape index: {}]   ;;  %s2672_s2 = inlined_call_operand.hbm [shape: bf16[256,128], index: 2, kind: input, shape index: {}]   ;;  %s2673_s3 = inlined_call_operand.vmem [shape: f32[16,128], index: 3, kind: input, shape index: {}]   ;;  %s2674_s4 = inlined_call_operand.hbm [shape: bf16[128,384], index: 4, kind: input, shape index: {}]   ;;  %s2675_s5 = inlined_call_operand.hbm [shape: bf16[128,128], index: 5, kind: input, shape index: {}]   ;;  %s2676_s6 = inlined_call_operand.hbm [shape: bf16[128,256], index: 6, kind: input, shape index: {}]   ;;  %s2677_s7 = inlined_call_operand.hbm [shape: bf16[256,128], index: 7, kind: input, shape index: {}]   ;;  %s2678_s8 = inlined_call_operand.vmem [shape: f32[1,128], index: 8, kind: input, shape index: {}]   ;;  %s2679_s9 = inlined_call_operand.vmem [shape: f32[1,128], index: 9, kind: input, shape index: {}]   ;;  %s2680_s10 = inlined_call_operand.vmem [shape: f32[1,128], index: 10, kind: input, shape index: {}]   ;;  %s2681_s11 = inlined_call_operand.vmem [shape: f32[1,128], index: 11, kind: input, shape index: {}]   ;;  %s2682_s12 = inlined_call_operand.hbm [shape: bf16[128,256], index: 12, kind: input, shape index: {}]   ;;  %s2683_s13 = inlined_call_operand.vmem [shape: f32[1,256], index: 13, kind: input, shape index: {}]   ;;  %s2684_s14 = inlined_call_operand.hbm [shape: f32[2,128], index: 14, kind: output, shape index: {}]  }
   0x1   :  { %20 = vsyncpa [#allocation6], 0 }
   0x2   :  { %21 = vsyncpa [#allocation9], 0 }
   0x3   :  { %22 = vsyncpa [#allocation12], 0 }
   0x4   :  { %23 = vsyncpa [#allocation4], 0  ;;  %s2318_s29 = smov [#allocation5]  }
   0x5   :  { %s47_s30 = sshll.u32 %s2318_s29, 4  ;;  %s48_s30 = int_to_ptr.vmem [resolvable:$true] %s47_s30 }
   0x6   :  { %s2176_s15 = scalar_lea.vmem %s48_s30, 3072  ;;  %p2181_p1 = scmp.lt.s32.totalorder %s48_s30, %s48_s30 }
   0x7   :  { %p2177_p0 = scmp.ne.s32.totalorder %s48_s30, %s2176_s15  ;;  %p2182_p2 = scmp.lt.s32.totalorder %s2176_s15, %s2176_s15 }
   0x9   :  { %p2183_p3 = por %p2182_p2, %p2181_p1 }
   0xb   :  { %p2184_p4 = pnand %p2183_p3, %p2177_p0 }
   0xd   :  { %2187 = shalt.err (!%p2184_p4)
}
   0xe   :  { %s2319_s16 = smov 192   ;;  %s2320_s17 = smov 12  }
   0xf   :  { %53 = dma.hbm_to_vmem [thread:$0]  %s2674_s4, 3072, %s48_s30, [#allocation6], %s2319_s16, %s2319_s16, %s2320_s17  }
  0x10   :  { %s2321_s20 = smov [#allocation8]  }
  0x11   :  { %s71_s21 = sshll.u32 %s2321_s20, 4  ;;  %s72_s21 = int_to_ptr.vmem [resolvable:$true] %s71_s21 }
  0x12   :  { %s2196_s22 = scalar_lea.vmem %s72_s21, 2048  ;;  %p2201_p6 = scmp.lt.s32.totalorder %s72_s21, %s72_s21 }
  0x13   :  { %p2197_p5 = scmp.ne.s32.totalorder %s72_s21, %s2196_s22  ;;  %p2202_p7 = scmp.lt.s32.totalorder %s2196_s22, %s2196_s22 }
  0x15   :  { %p2203_p8 = por %p2202_p7, %p2201_p6 }
  0x17   :  { %p2204_p9 = pnand %p2203_p8, %p2197_p5 }
  0x19   :  { %2207 = shalt.err (!%p2204_p9)
}
  0x1a   :  { %s2322_s23 = smov 128   ;;  %s2323_s24 = smov 8  }
  0x1b   :  { %77 = dma.hbm_to_vmem [thread:$0]  %s2676_s6, 2048, %s72_s21, [#allocation9], %s2322_s23, %s2322_s23, %s2323_s24  }
  0x1c   :  { %s2324_s4 = smov [#allocation2]  }
  0x1d   :  { %s33_s27 = sshll.u32 %s2324_s4, 4  ;;  %s34_s27 = int_to_ptr.vmem [resolvable:$true] %s33_s27 }
  0x1e   :  { %s2216_s28 = scalar_lea.vmem %s34_s27, 2048  ;;  %p2221_p11 = scmp.lt.s32.totalorder %s34_s27, %s34_s27 }
  0x1f   :  { %p2217_p10 = scmp.ne.s32.totalorder %s34_s27, %s2216_s28  ;;  %p2222_p12 = scmp.lt.s32.totalorder %s2216_s28, %s2216_s28 }
  0x21   :  { %p2223_p13 = por %p2222_p12, %p2221_p11 }
  0x23   :  { %p2224_p0 = pnand %p2223_p13, %p2217_p10 }
  0x25   :  { %2227 = shalt.err (!%p2224_p0)
}
  0x26   :  { %s2325_s29 = smov 64   ;;  %s2326_s30 = smov 4  }
  0x27   :  { %39 = dma.hbm_to_vmem [thread:$0]  %s2672_s2, 2048, %s34_s27, [#allocation3], %s2325_s29, %s2325_s29, %s2326_s30  }
  0x28   :  { %s2327_s17 = smov [#allocation7]   ;;  %s2328_s6 = smov [#allocation10]  }
  0x29   :  { %s59_s18 = sshll.u32 %s2327_s17, 4  ;;  %s83_s19 = sshll.u32 %s2328_s6, 4  ;;  %s60_s18 = int_to_ptr.vmem [resolvable:$true] %s59_s18  ;;  %s84_s19 = int_to_ptr.vmem [resolvable:$true] %s83_s19 }
  0x2a   :  { %s2236_s20 = scalar_lea.vmem %s60_s18, 1024  ;;  %p2241_p2 = scmp.lt.s32.totalorder %s60_s18, %s60_s18 }
  0x2b   :  { %p2237_p1 = scmp.ne.s32.totalorder %s60_s18, %s2236_s20  ;;  %p2242_p3 = scmp.lt.s32.totalorder %s2236_s20, %s2236_s20 }
  0x2d   :  { %p2243_p4 = por %p2242_p3, %p2241_p2 }
  0x2f   :  { %p2244_p5 = pnand %p2243_p4, %p2237_p1 }
  0x31   :  { %2247 = shalt.err (!%p2244_p5)
}
  0x32   :  { %65 = dma.hbm_to_vmem [thread:$0]  %s2675_s5, 1024, %s60_s18, [#allocation6], %s2325_s29, %s2325_s29, %s2326_s30  }
  0x33   :  { %s2256_s25 = scalar_lea.vmem %s84_s19, 2048  ;;  %p2261_p7 = scmp.lt.s32.totalorder %s84_s19, %s84_s19 }
  0x34   :  { %p2257_p6 = scmp.ne.s32.totalorder %s84_s19, %s2256_s25  ;;  %p2262_p8 = scmp.lt.s32.totalorder %s2256_s25, %s2256_s25 }
  0x36   :  { %p2263_p9 = por %p2262_p8, %p2261_p7 }
  0x38   :  { %p2264_p10 = pnand %p2263_p9, %p2257_p6 }
  0x3a   :  { %2267 = shalt.err (!%p2264_p10)
}
  0x3b   :  { %89 = dma.hbm_to_vmem [thread:$0]  %s2677_s7, 2048, %s84_s19, [#allocation9], %s2325_s29, %s2325_s29, %s2326_s30  }
  0x3c   :  { %s2329_s4 = smov [#allocation11]  }
  0x3d   :  { %s103_s27 = sshll.u32 %s2329_s4, 4  ;;  %s104_s27 = int_to_ptr.vmem [resolvable:$true] %s103_s27 }
  0x3e   :  { %s2276_s28 = scalar_lea.vmem %s104_s27, 2048  ;;  %p2281_p12 = scmp.lt.s32.totalorder %s104_s27, %s104_s27 }
  0x3f   :  { %p2277_p11 = scmp.ne.s32.totalorder %s104_s27, %s2276_s28  ;;  %p2282_p13 = scmp.lt.s32.totalorder %s2276_s28, %s2276_s28 }
  0x41   :  { %p2283_p0 = por %p2282_p13, %p2281_p12 }
  0x43   :  { %p2284_p1 = pnand %p2283_p0, %p2277_p11 }
  0x45   :  { %2287 = shalt.err (!%p2284_p1)
}
  0x46   :  { %109 = dma.hbm_to_vmem [thread:$0]  %s2682_s12, 2048, %s104_s27, [#allocation12], %s2322_s23, %s2322_s23, %s2323_s24  }
  0x47   :  { %2308 = dma.done.wait [#allocation3], 2048  }
  0x48   :  { %2309 = vsyncadd [#allocation3], 4294965248 }
  0x49   :  { %2310 = dma.done.wait [#allocation6], 4096  }
  0x4a   :  { %2311 = vsyncadd [#allocation6], 4294963200 }
  0x4b   :  { %2312 = dma.done.wait [#allocation9], 4096  }
  0x4c   :  { %2313 = vsyncadd [#allocation9], 4294963200 }
  0x4d   :  { %2314 = dma.done.wait [#allocation12], 2048  }
  0x4e   :  { %2315 = vsyncadd [#allocation12], 4294965248  ;;  %v2330_v0 = vmov 0   ;;  %v131_v1 = vld [vmem:[%s2670_s0] sm:$0xff]  ;;  %v132_v2 = vld [vmem:[%s2670_s0 + $0x8] sm:$0xff]  ;;  %v133_v19 = vlaneseq  ;;  %v2332_v37 = vmov 0.0  }
  0x4f   :  { %2017 = vset.pattern.permute.xlu0 %v2330_v0  ;;  %557 = vmatprep.mubr.bf16.mxu1 %v2330_v0  ;;  %v2018_v3 = vld [vmem:[#allocation2 + $0x78] sm:$0xff]   ;;  %v2020_v5 = vld [vmem:[#allocation2 + $0x70] sm:$0xff]   ;;  %v2022_v7 = vld [vmem:[#allocation2 + $0x68] sm:$0xff]   ;;  %v2331_v24 = vmov 1.0|1.0   ;;  %vm2333_vm6 = vmmov 0  }
  0x50   :  { %137 = vperm.xlu0 %2017, %v131_v1   ;;  %v2019_v4 = vld [vmem:[#allocation2 + $0x38] sm:$0xff]   ;;  %1836 = vmatprep.subr.bf16.mxu0 %v2018_v3  ;;  %v2021_v6 = vld [vmem:[#allocation2 + $0x30] sm:$0xff]   ;;  %v2023_v8 = vld [vmem:[#allocation2 + $0x28] sm:$0xff]   ;;  %v2444_v20 = vand.u32 127, %v133_v19  ;;  %vm668_vm10 = vcmask 130048   ;;  %vm1461_vm15 = vcmask 1041408  }
  0x51   :  { %1837 = vmatpush3.bf16.msra.mxu0 %v2019_v4  ;;  %v2024_v9 = vld [vmem:[#allocation2 + $0x60] sm:$0xff]   ;;  %v2026_v11 = vld [vmem:[#allocation2 + $0x58] sm:$0xff]   ;;  %v2028_v13 = vld [vmem:[#allocation2 + $0x50] sm:$0xff]  }
  0x52   :  { %1838 = vmatprep.subr.bf16.mxu0 %v2020_v5  ;;  %v2025_v10 = vld [vmem:[#allocation2 + $0x20] sm:$0xff]   ;;  %v2027_v12 = vld [vmem:[#allocation2 + $0x18] sm:$0xff]   ;;  %v2029_v14 = vld [vmem:[#allocation2 + $0x10] sm:$0xff]   ;;  %v135_v22 = vadd.s32 128, %v2444_v20 }
  0x53   :  { %v2030_v15 = vld [vmem:[#allocation2 + $0x48] sm:$0xff]   ;;  %v2032_v17 = vld [vmem:[#allocation2 + $0x40] sm:$0xff]   ;;  %v2037_v38 = vld [vmem:[#allocation5 + $0xb0] ss:$12 sps:$4 sm:$0xff]  }
  0x54   :  { %140 = vperm.xlu0 %2017, %v132_v2   ;;  %v2031_v16 = vld [vmem:[#allocation2 + $0x8] sm:$0xff]   ;;  %v2033_v18 = vld [vmem:[#allocation2] sm:$0xff]   ;;  %v2040_v48 = vld [vmem:[#allocation5 + $0x90] ss:$12 sps:$4 sm:$0xff]  }
  0x55   :  { %1839 = vmatpush3.bf16.msra.mxu0 %v2021_v6  ;;  %v184_v26 = vld [vmem:[%s2673_s3] sm:$0xff]  ;;  %v185_v31 = vld [vmem:[%s2673_s3 + $0x8] sm:$0xff]  ;;  %v2053_v58 = vld [vmem:[#allocation5 + $0x50] ss:$12 sps:$4 sm:$0xff]  }
  0x56   :  { %1840 = vmatprep.subr.bf16.mxu0 %v2022_v7  ;;  %v2034_v35 = vld [vmem:[#allocation5 + $0xac] ss:$12 sps:$4 sm:$0xff]   ;;  %v2036_v36 = vld [vmem:[#allocation5 + $0xa8] ss:$12 sps:$4 sm:$0xff]   ;;  %v2046_v53 = vld [vmem:[#allocation5 + $0x64] ss:$12 sps:$4 sm:$0xff]  }
  0x57   :  { %525 = vmatprep.subr.bf16.mxu1 %v2034_v35  ;;  %v2038_v47 = vld [vmem:[#allocation5 + $0x94] ss:$12 sps:$4 sm:$0xff]   ;;  %v2041_v49 = vld [vmem:[#allocation5 + $0x98] ss:$12 sps:$4 sm:$0xff]   ;;  %v2042_v50 = vld [vmem:[#allocation5 + $0x7c] ss:$12 sps:$4 sm:$0xff]  }
  0x58   :  { %526 = vmatpush1.bf16.msra.mxu1 %v2036_v36  ;;  %v2044_v51 = vld [vmem:[#allocation5 + $0x78] ss:$12 sps:$4 sm:$0xff]   ;;  %v2045_v52 = vld [vmem:[#allocation5 + $0x80] ss:$12 sps:$4 sm:$0xff]   ;;  %v2049_v55 = vld [vmem:[#allocation5 + $0x68] ss:$12 sps:$4 sm:$0xff]  }
  0x59   :  { %1841 = vmatpush3.bf16.msra.mxu0 %v2023_v8  ;;  %527 = vmatprep.subr.bf16.mxu1 %v2038_v47  ;;  %v2048_v54 = vld [vmem:[#allocation5 + $0x60] ss:$12 sps:$4 sm:$0xff]   ;;  %v2052_v57 = vld [vmem:[#allocation5 + $0x48] ss:$12 sps:$4 sm:$0xff]   ;;  %v2056_v60 = vld [vmem:[#allocation5 + $0x30] ss:$12 sps:$4 sm:$0xff]  }
  0x5a   :  { %1842 = vmatprep.subr.bf16.mxu0 %v2024_v9  ;;  %v2050_v56 = vld [vmem:[#allocation5 + $0x4c] ss:$12 sps:$4 sm:$0xff]   ;;  %v2054_v59 = vld [vmem:[#allocation5 + $0x34] ss:$12 sps:$4 sm:$0xff]   ;;  %v2058_v62 = vld [vmem:[#allocation5 + $0x1c] ss:$12 sps:$4 sm:$0xff]  }
  0x5b   :  { %v2057_v61 = vld [vmem:[#allocation5 + $0x38] ss:$12 sps:$4 sm:$0xff]   ;;  %v2061_v1 = vld [vmem:[#allocation5 + $0x20] ss:$12 sps:$4 sm:$0xff]   ;;  %v2065_v4 = vld [vmem:[#allocation5 + $0x8] ss:$12 sps:$4 sm:$0xff]  }
  0x5c   :  { %528 = vmatpush1.bf16.msra.mxu1 %v2040_v48  ;;  %v2060_v63 = vld [vmem:[#allocation5 + $0x18] ss:$12 sps:$4 sm:$0xff]   ;;  %v2064_v3 = vld [vmem:[#allocation5] ss:$12 sps:$4 sm:$0xff]  }
  0x5d   :  { %1843 = vmatpush3.bf16.msra.mxu0 %v2025_v10  ;;  %529 = vmatprep.subr.bf16.mxu1 %v2042_v50  ;;  %v2062_v2 = vld [vmem:[#allocation5 + $0x4] ss:$12 sps:$4 sm:$0xff]  }
  0x5e   :  { %1844 = vmatprep.subr.bf16.mxu0 %v2026_v11 }
  0x60   :  { %530 = vmatpush1.bf16.msra.mxu1 %v2044_v51 }
  0x61   :  { %1845 = vmatpush3.bf16.msra.mxu0 %v2027_v12  ;;  %531 = vmatprep.subr.bf16.mxu1 %v2046_v53 }
  0x62   :  { %1846 = vmatprep.subr.bf16.mxu0 %v2028_v13  ;;  %v1717_v13 = vld [vmem:[%s2678_s8] ss:$0 sm:$0xff] }
  0x64   :  { %532 = vmatpush1.bf16.msra.mxu1 %v2048_v54 }
  0x65   :  { %1847 = vmatpush3.bf16.msra.mxu0 %v2029_v14  ;;  %533 = vmatprep.subr.bf16.mxu1 %v2050_v56 }
  0x66   :  { %1848 = vmatprep.subr.bf16.mxu0 %v2030_v15 }
  0x68   :  { %534 = vmatpush1.bf16.msra.mxu1 %v2052_v57 }
  0x69   :  { %1849 = vmatpush3.bf16.msra.mxu0 %v2031_v16  ;;  %535 = vmatprep.subr.bf16.mxu1 %v2054_v59 }
  0x6a   :  { %1850 = vmatprep.subr.bf16.mxu0 %v2032_v17  ;;  %v1718_v17 = vld [vmem:[%s2679_s9] ss:$0 sm:$0xff] }
  0x6c   :  { %536 = vmatpush1.bf16.msra.mxu1 %v2056_v60 }
  0x6d   :  { %1851 = vmatpush3.bf16.msra.mxu0 %v2033_v18  ;;  %537 = vmatprep.subr.bf16.mxu1 %v2058_v62 }
  0x6e   :  { %1940 = vmatprep.subr.bf16.mxu0 %v2332_v37 }
  0x70   :  { %538 = vmatpush1.bf16.msra.mxu1 %v2060_v63 }
  0x71   :  { %539 = vmatprep.subr.bf16.mxu1 %v2062_v2 }
  0x74   :  { %540 = vmatpush1.bf16.msra.mxu1 %v2064_v3 }
  0x75   :  { %1960 = vmatprep.subr.bf16.mxu1 %v2332_v37 }
  0xcb   :  { %v138_v21 = vpop.permute.xlu0 %137 }
  0xcc   :  { %vm142_vm0 = vcmp.eq.s32.totalorder %v2444_v20, %v138_v21  ;;  %vm143_vm4 = vcmp.eq.s32.totalorder %v135_v22, %v138_v21 }
  0xcf   :  { %v141_v23 = vpop.permute.xlu0 %140 }
  0xd0   :  { %vm144_vm1 = vcmp.eq.s32.totalorder %v2444_v20, %v141_v23  ;;  %vm145_vm2 = vcmp.eq.s32.totalorder %v135_v22, %v141_v23 }
  0xd1   :  { %vm1715_vm3 = vmpackc.low %vm144_vm1, %vm142_vm0 }
  0xd2   :  { %vm1713_vm5 = vmpackc.low %vm145_vm2, %vm143_vm4 }
  0xd3   :  { %1714 = vmatprep.mubr.msk.bf16.mxu0 %vm1713_vm5, %v2331_v24 }
  0xd4   :  { %1716 = vmatmul.mubr.msk.bf16.vlgmr.msra.gmra.mxu0 %vm1715_vm3, %v2331_v24 }
  0xd5   :  { %1941 = vmatpush3.bf16.msra.mxu0 %v2037_v38  ;;  %1956 = vmatprep.mubr.msk.bf16.mxu0 %vm2333_vm6, %v2332_v37  ;;  %v2498_v38 = vshrl.u32 %v133_v19, 7 }
  0xd6   :  { %1942 = vmatprep.subr.bf16.mxu0 %v2332_v37 }
  0xd7   :  { %vm662_vm8 = vcmp.le.s32.totalorder %v2444_v20, %v2498_v38 }
  0xd9   :  { %1943 = vmatpush3.bf16.msra.mxu0 %v2041_v49 }
  0xda   :  { %1944 = vmatprep.subr.bf16.mxu0 %v2332_v37 }
  0xdd   :  { %1945 = vmatpush3.bf16.msra.mxu0 %v2045_v52 }
  0xde   :  { %1946 = vmatprep.subr.bf16.mxu0 %v2332_v37 }
  0xe1   :  { %1947 = vmatpush3.bf16.msra.mxu0 %v2049_v55 }
  0xe2   :  { %1948 = vmatprep.subr.bf16.mxu0 %v2332_v37 }
  0xe5   :  { %1949 = vmatpush3.bf16.msra.mxu0 %v2053_v58 }
  0xe6   :  { %1950 = vmatprep.subr.bf16.mxu0 %v2332_v37 }
  0xe9   :  { %1951 = vmatpush3.bf16.msra.mxu0 %v2057_v61 }
  0xea   :  { %1952 = vmatprep.subr.bf16.mxu0 %v2332_v37 }
  0xed   :  { %1953 = vmatpush3.bf16.msra.mxu0 %v2061_v1 }
  0xee   :  { %1954 = vmatprep.subr.bf16.mxu0 %v2332_v37 }
  0xf1   :  { %1955 = vmatpush3.bf16.msra.mxu0 %v2065_v4 }
 0x194   :  { %v1852_v25 = vpop.f32.mrf.mxu0 }
 0x196   :  { %v1853_v27 = vpop.f32.mrf.mxu0 }
 0x197   :  { %v1854_v28 = vadd.f32 %v1853_v27, %v1852_v25 }
 0x198   :  { %v1855_v29 = vpop.f32.mrf.mxu0 }
 0x199   :  { %v2452_v30 = vadd.f32 %v1854_v28, %v184_v26 }
 0x19a   :  { %v1856_v32 = vpop.f32.mrf.mxu0 }
 0x19b   :  { %v1857_v33 = vadd.f32 %v1856_v32, %v1855_v29  ;;  %323 = vadd.xlane.f32.xlu1 %v2452_v30 }
 0x19d   :  { %v2458_v34 = vadd.f32 %v1857_v33, %v185_v31 }
 0x19f   :  { %325 = vadd.xlane.f32.xlu1 %v2458_v34 }
 0x224   :  { %v324_v39 = vpop.xlane.xlu1 %323 }
 0x225   :  { %v328_v40 = vmul.f32 0.0078125, %v324_v39  ;;  %v657_v39 = vshrl.u32 %v2444_v20, 3 }
 0x227   :  { %v2464_v41 = vsub.f32 %v2452_v30, %v328_v40  ;;  %v658_v40 = vshrl.u32 %v2498_v38, 3 }
 0x228   :  { %v326_v42 = vpop.xlane.xlu1 %325 }
 0x229   :  { %v329_v43 = vmul.f32 0.0078125, %v326_v42  ;;  %v332_v44 = vmul.f32 %v2464_v41, %v2464_v41  ;;  %vm660_vm7 = vcmp.eq.s32.totalorder %v657_v39, %v658_v40  ;;  %v2077_v40 = vld [vmem:[#allocation8 + $0x60] ss:$8 sps:$4 sm:$0xff]  }
 0x22a   :  { %vm664_vm9 = vmand %vm662_vm8, %vm660_vm7 }
 0x22b   :  { %v2469_v45 = vsub.f32 %v2458_v34, %v329_v43  ;;  %334 = vadd.xlane.f32.xlu0 %v332_v44 }
 0x22d   :  { %v333_v46 = vmul.f32 %v2469_v45, %v2469_v45 }
 0x22f   :  { %336 = vadd.xlane.f32.xlu1 %v333_v46 }
 0x2b4   :  { %v335_v5 = vpop.xlane.xlu0 %334 }
 0x2b5   :  { %v338_v6 = vmul.f32 0.0078125, %v335_v5  ;;  %v2066_v5 = vld [vmem:[#allocation7 + $0x38] sm:$0xff]  }
 0x2b7   :  { %v340_v7 = vadd.f32 1e-05, %v338_v6 }
 0x2b8   :  { %v337_v8 = vpop.xlane.xlu1 %336 }
 0x2b9   :  { %2138 = vrsqrt.f32 %v340_v7  ;;  %v339_v9 = vmul.f32 0.0078125, %v337_v8  ;;  %v2067_v7 = vld [vmem:[#allocation7 + $0x30] sm:$0xff]   ;;  %v2068_v8 = vld [vmem:[#allocation7 + $0x28] sm:$0xff]  }
 0x2bb   :  { %v341_v10 = vadd.f32 1e-05, %v339_v9  ;;  %v2069_v9 = vld [vmem:[#allocation7 + $0x20] sm:$0xff]  }
 0x2bd   :  { %2140 = vrsqrt.f32 %v341_v10  ;;  %v2070_v10 = vld [vmem:[#allocation7 + $0x18] sm:$0xff]  }
 0x2c6   :  { %v2139_v11 = vpop.eup %2138 }
 0x2c7   :  { %v344_v12 = vmul.f32 %v2139_v11, %v2464_v41  ;;  %v2503_v41 = vadd.s32 8, %v2498_v38  ;;  %v2071_v11 = vld [vmem:[#allocation7 + $0x10] sm:$0xff]  }
 0x2c9   :  { %v353_v16 = vmul.f32 %v1717_v13, %v344_v12  ;;  %v659_v42 = vshrl.u32 %v2503_v41, 3  ;;  %vm663_vm12 = vcmp.le.s32.totalorder %v2444_v20, %v2503_v41  ;;  %v2072_v12 = vld [vmem:[#allocation7 + $0x8] sm:$0xff]  }
 0x2ca   :  { %v2141_v14 = vpop.eup %2140 }
 0x2cb   :  { %v345_v15 = vmul.f32 %v2141_v14, %v2469_v45  ;;  %v362_v21 = vadd.f32 %v1718_v17, %v353_v16  ;;  %vm661_vm11 = vcmp.eq.s32.totalorder %v657_v39, %v659_v42  ;;  %v2082_v42 = vld [vmem:[#allocation8 + $0x54] ss:$8 sps:$4 sm:$0xff]  }
 0x2cc   :  { %vm665_vm13 = vmand %vm663_vm12, %vm661_vm11 }
 0x2cd   :  { %v354_v18 = vmul.f32 %v1717_v13, %v345_v15  ;;  %v2073_v13 = vld [vmem:[#allocation7] sm:$0xff]  }
 0x2cf   :  { %v363_v22 = vadd.f32 %v1718_v17, %v354_v18 }
 0x2d1   :  { %v364_v23 = vpack.c.bf16 %v363_v22, %v362_v21 }
 0x2d3   :  { %558 = vmatmul.mubr.bf16.vlgmr.msra.gmra.mxu1 %v364_v23  ;;  %1957 = vmatmul.mubr.bf16.vlgmr.msra.gmra.mxu0 %v364_v23 }
 0x2d4   :  { %1962 = vmatprep.mubr.msk.bf16.mxu1 %vm2333_vm6, %v2332_v37  ;;  %1014 = vmatprep.mubr.bf16.mxu0 %v2330_v0 }
 0x393   :  { %v559_v24 = vpop.f32.mrf.mxu1  ;;  %v602_v25 = vpop.f32.mrf.mxu0 }
 0x395   :  { %v561_v26 = vpop.f32.mrf.mxu1  ;;  %v1958_v27 = vpop.f32.mrf.mxu0 }
 0x396   :  { %v2074_v27 = vld [vmem:[#allocation8 + $0x70] ss:$8 sps:$4 sm:$0xff]  }
 0x397   :  { %v563_v28 = vpop.f32.mrf.mxu1  ;;  %v605_v29 = vpop.f32.mrf.mxu0 }
 0x398   :  { %v609_v35 = vpack.c.bf16 %v563_v28, %v559_v24  ;;  %v692_v36 = vpack.c.bf16 %v605_v29, %v602_v25  ;;  %v2076_v28 = vld [vmem:[#allocation8 + $0x74] ss:$8 sps:$4 sm:$0xff]  }
 0x399   :  { %v565_v31 = vpop.f32.mrf.mxu1  ;;  %v1959_v32 = vpop.f32.mrf.mxu0  ;;  %982 = vmatprep.subr.bf16.mxu0 %v2076_v28 }
 0x39a   :  { %v610_v33 = vpack.c.bf16 %v565_v31, %v561_v26  ;;  %983 = vmatpush1.bf16.msra.mxu0 %v2074_v27 }
 0x39c   :  { %1961 = vmatpush3.bf16.xpose.msra.mxu1 %v610_v33 }
 0x39d   :  { %1966 = vmatprep.subr.bf16.mxu1 %v2332_v37 }
 0x3a3   :  { %1963 = vmatmul.mubr.bf16.vlgmr.msra.gmra.mxu1 %v609_v35 }
 0x3a4   :  { %1967 = vmatpush3.bf16.msra.mxu1 %v692_v36  ;;  %1968 = vmatprep.mubr.msk.bf16.mxu1 %vm2333_vm6, %v2332_v37 }
 0x3a5   :  { %1972 = vmatprep.subr.bf16.mxu1 %v2332_v37 }
 0x463   :  { %v645_v43 = vpop.f32.mrf.mxu1 }
 0x464   :  { %v652_v44 = vmul.f32 0.088388346, %v645_v43  ;;  %v2080_v43 = vld [vmem:[#allocation8 + $0x50] ss:$8 sps:$4 sm:$0xff]  }
 0x465   :  { %v1964_v19 = vpop.f32.mrf.mxu1 }
 0x466   :  { %v666_v45 = vsel %vm664_vm9, %v652_v44, -1e+30  ;;  %v2083_v44 = vld [vmem:[#allocation8 + $0x40] ss:$8 sps:$4 sm:$0xff]   ;;  %v2085_v19 = vld [vmem:[#allocation8 + $0x44] ss:$8 sps:$4 sm:$0xff]  }
 0x467   :  { %v648_v46 = vpop.f32.mrf.mxu1  ;;  %v669_v47 = vsel %vm668_vm10, %v666_v45, -inf }
 0x468   :  { %v653_v48 = vmul.f32 0.088388346, %v648_v46  ;;  %670 = vmax.xlane.f32.xlu1 %v669_v47  ;;  %v2086_v46 = vld [vmem:[#allocation8 + $0x30] ss:$8 sps:$4 sm:$0xff]   ;;  %v2091_v47 = vld [vmem:[#allocation8 + $0x24] ss:$8 sps:$4 sm:$0xff]  }
 0x469   :  { %v1965_v49 = vpop.f32.mrf.mxu1 }
 0x46a   :  { %v667_v50 = vsel %vm665_vm13, %v653_v48, -1e+30  ;;  %v2089_v48 = vld [vmem:[#allocation8 + $0x20] ss:$8 sps:$4 sm:$0xff]   ;;  %v2094_v49 = vld [vmem:[#allocation8 + $0x14] ss:$8 sps:$4 sm:$0xff]  }
 0x46b   :  { %v672_v51 = vsel %vm668_vm10, %v667_v50, -inf }
 0x46c   :  { %673 = vmax.xlane.f32.xlu1 %v672_v51  ;;  %v2097_v51 = vld [vmem:[#allocation8 + $0x4] ss:$8 sps:$4 sm:$0xff]  }
 0x4f1   :  { %v671_v52 = vpop.xlane.xlu1 %670 }
 0x4f2   :  { %v675_v53 = vsub.f32 %v666_v45, %v671_v52  ;;  %v2088_v45 = vld [vmem:[#allocation8 + $0x34] ss:$8 sps:$4 sm:$0xff]   ;;  %v2095_v52 = vld [vmem:[#allocation8] ss:$8 sps:$4 sm:$0xff]  }
 0x4f4   :  { %v677_v54 = vmul.f32 1.442695, %v675_v53 }
 0x4f5   :  { %v674_v55 = vpop.xlane.xlu1 %673 }
 0x4f6   :  { %2142 = vpow2.f32 %v677_v54  ;;  %v676_v56 = vsub.f32 %v667_v50, %v674_v55  ;;  %v2092_v50 = vld [vmem:[#allocation8 + $0x10] ss:$8 sps:$4 sm:$0xff]  }
 0x4f8   :  { %v679_v57 = vmul.f32 1.442695, %v676_v56 }
 0x4fa   :  { %2144 = vpow2.f32 %v679_v57 }
 0x503   :  { %v2143_v58 = vpop.eup %2142 }
 0x504   :  { %v681_v59 = vsel %vm668_vm10, %v2143_v58, 0.0 }
 0x505   :  { %682 = vadd.xlane.f32.xlu1 %v681_v59 }
 0x507   :  { %v2145_v60 = vpop.eup %2144 }
 0x508   :  { %v684_v61 = vsel %vm668_vm10, %v2145_v60, 0.0 }
 0x509   :  { %685 = vadd.xlane.f32.xlu1 %v684_v61  ;;  %v1752_v61 = vld [vmem:[%s2680_s10] ss:$0 sm:$0xff] }
 0x58e   :  { %v683_v62 = vpop.xlane.xlu1 %682 }
 0x58f   :  { %2146 = vrcp.f32 %v683_v62 }
 0x592   :  { %v686_v63 = vpop.xlane.xlu1 %685 }
 0x593   :  { %2148 = vrcp.f32 %v686_v63 }
 0x59c   :  { %v2147_v1 = vpop.eup %2146 }
 0x59d   :  { %v689_v3 = vmul.f32 %v2147_v1, %v2143_v58 }
 0x5a0   :  { %v2149_v2 = vpop.eup %2148 }
 0x5a1   :  { %v690_v4 = vmul.f32 %v2149_v2, %v2145_v60  ;;  %v1753_v2 = vld [vmem:[%s2681_s11] ss:$0 sm:$0xff] }
 0x5a3   :  { %v691_v6 = vpack.c.bf16 %v690_v4, %v689_v3 }
 0x5a5   :  { %1969 = vmatmul.mubr.msk.bf16.vlgmr.msra.gmra.mxu1 %vm668_vm10, %v691_v6 }
 0x5a6   :  { %1973 = vmatpush3.bf16.msra.mxu1 %v2066_v5  ;;  %1988 = vmatprep.mubr.msk.bf16.mxu1 %vm2333_vm6, %v2332_v37 }
 0x5a7   :  { %1974 = vmatprep.subr.bf16.mxu1 %v2332_v37 }
 0x5aa   :  { %1975 = vmatpush3.bf16.msra.mxu1 %v2067_v7  ;;  %v2098_v7 = vld [vmem:[#allocation10 + $0x78] sm:$0xff]  }
 0x5ab   :  { %1976 = vmatprep.subr.bf16.mxu1 %v2332_v37 }
 0x5ae   :  { %1977 = vmatpush3.bf16.msra.mxu1 %v2068_v8  ;;  %v2099_v8 = vld [vmem:[#allocation10 + $0x38] sm:$0xff]  }
 0x5af   :  { %1978 = vmatprep.subr.bf16.mxu1 %v2332_v37 }
 0x5b2   :  { %1979 = vmatpush3.bf16.msra.mxu1 %v2069_v9  ;;  %v2100_v9 = vld [vmem:[#allocation10 + $0x70] sm:$0xff]  }
 0x5b3   :  { %1980 = vmatprep.subr.bf16.mxu1 %v2332_v37 }
 0x5b6   :  { %1981 = vmatpush3.bf16.msra.mxu1 %v2070_v10  ;;  %v2101_v10 = vld [vmem:[#allocation10 + $0x30] sm:$0xff]  }
 0x5b7   :  { %1982 = vmatprep.subr.bf16.mxu1 %v2332_v37 }
 0x5ba   :  { %1983 = vmatpush3.bf16.msra.mxu1 %v2071_v11  ;;  %v2102_v11 = vld [vmem:[#allocation10 + $0x68] sm:$0xff]  }
 0x5bb   :  { %1984 = vmatprep.subr.bf16.mxu1 %v2332_v37 }
 0x5be   :  { %1985 = vmatpush3.bf16.msra.mxu1 %v2072_v12  ;;  %v2103_v12 = vld [vmem:[#allocation10 + $0x28] sm:$0xff]  }
 0x5bf   :  { %1986 = vmatprep.subr.bf16.mxu1 %v2332_v37 }
 0x5c2   :  { %1987 = vmatpush3.bf16.msra.mxu1 %v2073_v13  ;;  %v2104_v13 = vld [vmem:[#allocation10 + $0x60] sm:$0xff]  }
 0x5c3   :  { %1880 = vmatprep.subr.bf16.mxu1 %v2098_v7 }
 0x665   :  { %v730_v14 = vpop.f32.mrf.mxu1 }
 0x667   :  { %v1970_v15 = vpop.f32.mrf.mxu1 }
 0x668   :  { %v2106_v15 = vld [vmem:[#allocation10 + $0x58] sm:$0xff]  }
 0x669   :  { %v733_v16 = vpop.f32.mrf.mxu1 }
 0x66a   :  { %v737_v17 = vpack.c.bf16 %v733_v16, %v730_v14  ;;  %v2105_v14 = vld [vmem:[#allocation10 + $0x20] sm:$0xff]   ;;  %v2107_v16 = vld [vmem:[#allocation10 + $0x18] sm:$0xff]  }
 0x66b   :  { %v1971_v18 = vpop.f32.mrf.mxu1 }
 0x66c   :  { %1989 = vmatmul.mubr.bf16.vlgmr.msra.gmra.mxu1 %v737_v17  ;;  %v2108_v17 = vld [vmem:[#allocation10 + $0x50] sm:$0xff]  }
 0x66d   :  { %1881 = vmatpush3.bf16.msra.mxu1 %v2099_v8  ;;  %v2109_v18 = vld [vmem:[#allocation10 + $0x10] sm:$0xff]  }
 0x66e   :  { %1882 = vmatprep.subr.bf16.mxu1 %v2100_v9  ;;  %v1234_v9 = vmul.u32 8, %v2498_v38 }
 0x671   :  { %1883 = vmatpush3.bf16.msra.mxu1 %v2101_v10 }
 0x672   :  { %1884 = vmatprep.subr.bf16.mxu1 %v2102_v11 }
 0x675   :  { %1885 = vmatpush3.bf16.msra.mxu1 %v2103_v12  ;;  %v1235_v12 = vadd.s32 7, %v1234_v9 }
 0x676   :  { %1886 = vmatprep.subr.bf16.mxu1 %v2104_v13 }
 0x677   :  { %vm1236_vm14 = vcmp.eq.s32.totalorder %v2444_v20, %v1235_v12 }
 0x679   :  { %1887 = vmatpush3.bf16.msra.mxu1 %v2105_v14 }
 0x67a   :  { %1888 = vmatprep.subr.bf16.mxu1 %v2106_v15 }
 0x67d   :  { %1889 = vmatpush3.bf16.msra.mxu1 %v2107_v16 }
 0x67e   :  { %1890 = vmatprep.subr.bf16.mxu1 %v2108_v17  ;;  %v2116_v17 = vld [vmem:[#allocation11 + $0x74] ss:$8 sps:$4 sm:$0xff]  }
 0x681   :  { %1891 = vmatpush3.bf16.msra.mxu1 %v2109_v18 }
 0x72c   :  { %v836_v21 = vpop.f32.mrf.mxu1 }
 0x72d   :  { %v2525_v22 = vadd.f32 %v836_v21, %v2452_v30  ;;  %v2110_v21 = vld [vmem:[#allocation10 + $0x48] sm:$0xff]  }
 0x72e   :  { %v1990_v23 = vpop.f32.mrf.mxu1  ;;  %1892 = vmatprep.subr.bf16.mxu1 %v2110_v21  ;;  %v1237_v21 = vsel %vm1236_vm14, 1.0, %v2332_v37 }
 0x72f   :  { %845 = vadd.xlane.f32.xlu1 %v2525_v22  ;;  %v2111_v23 = vld [vmem:[#allocation10 + $0x8] sm:$0xff]  }
 0x730   :  { %v839_v24 = vpop.f32.mrf.mxu1  ;;  %1893 = vmatpush3.bf16.msra.mxu1 %v2111_v23  ;;  %v2114_v23 = vld [vmem:[#allocation11 + $0x70] ss:$8 sps:$4 sm:$0xff]  }
 0x731   :  { %v2529_v25 = vadd.f32 %v839_v24, %v2458_v34  ;;  %v2079_v34 = vld [vmem:[#allocation8 + $0x64] ss:$8 sps:$4 sm:$0xff]  }
 0x732   :  { %v1991_v26 = vpop.f32.mrf.mxu1  ;;  %984 = vmatprep.subr.bf16.mxu0 %v2079_v34  ;;  %v2112_v24 = vld [vmem:[#allocation10 + $0x40] sm:$0xff]  }
 0x733   :  { %847 = vadd.xlane.f32.xlu1 %v2529_v25  ;;  %985 = vmatpush1.bf16.msra.mxu0 %v2077_v40  ;;  %v2113_v26 = vld [vmem:[#allocation10] sm:$0xff]  }
 0x734   :  { %986 = vmatprep.subr.bf16.mxu0 %v2082_v42  ;;  %1894 = vmatprep.subr.bf16.mxu1 %v2112_v24  ;;  %v2119_v24 = vld [vmem:[#allocation11 + $0x64] ss:$8 sps:$4 sm:$0xff]  }
 0x735   :  { %1895 = vmatpush3.bf16.msra.mxu1 %v2113_v26  ;;  %v2117_v26 = vld [vmem:[#allocation11 + $0x60] ss:$8 sps:$4 sm:$0xff]  }
 0x737   :  { %987 = vmatpush1.bf16.msra.mxu0 %v2080_v43 }
 0x738   :  { %988 = vmatprep.subr.bf16.mxu0 %v2085_v19 }
 0x73b   :  { %989 = vmatpush1.bf16.msra.mxu0 %v2083_v44 }
 0x73c   :  { %990 = vmatprep.subr.bf16.mxu0 %v2088_v45 }
 0x73f   :  { %991 = vmatpush1.bf16.msra.mxu0 %v2086_v46 }
 0x740   :  { %992 = vmatprep.subr.bf16.mxu0 %v2091_v47 }
 0x743   :  { %993 = vmatpush1.bf16.msra.mxu0 %v2089_v48 }
 0x744   :  { %994 = vmatprep.subr.bf16.mxu0 %v2094_v49 }
 0x747   :  { %995 = vmatpush1.bf16.msra.mxu0 %v2092_v50 }
 0x748   :  { %996 = vmatprep.subr.bf16.mxu0 %v2097_v51 }
 0x74b   :  { %997 = vmatpush1.bf16.msra.mxu0 %v2095_v52 }
 0x74c   :  { %1992 = vmatprep.subr.mxu0 %v2332_v37 }
 0x7b8   :  { %v846_v29 = vpop.xlane.xlu1 %845 }
 0x7b9   :  { %v849_v31 = vmul.f32 0.0078125, %v846_v29 }
 0x7bb   :  { %v851_v32 = vsub.f32 %v2525_v22, %v849_v31 }
 0x7bc   :  { %v848_v30 = vpop.xlane.xlu1 %847 }
 0x7bd   :  { %v850_v33 = vmul.f32 0.0078125, %v848_v30  ;;  %v853_v35 = vmul.f32 %v851_v32, %v851_v32 }
 0x7bf   :  { %v852_v36 = vsub.f32 %v2529_v25, %v850_v33  ;;  %855 = vadd.xlane.f32.xlu1 %v853_v35 }
 0x7c1   :  { %v854_v39 = vmul.f32 %v852_v36, %v852_v36 }
 0x7c3   :  { %857 = vadd.xlane.f32.xlu0 %v854_v39 }
 0x848   :  { %v856_v53 = vpop.xlane.xlu1 %855 }
 0x849   :  { %v859_v54 = vmul.f32 0.0078125, %v856_v53 }
 0x84b   :  { %v861_v55 = vadd.f32 1e-05, %v859_v54 }
 0x84c   :  { %v858_v56 = vpop.xlane.xlu0 %857 }
 0x84d   :  { %2150 = vrsqrt.f32 %v861_v55  ;;  %v860_v57 = vmul.f32 0.0078125, %v858_v56 }
 0x84f   :  { %v862_v58 = vadd.f32 1e-05, %v860_v57 }
 0x851   :  { %2152 = vrsqrt.f32 %v862_v58 }
 0x85a   :  { %v2151_v59 = vpop.eup %2150 }
 0x85b   :  { %v865_v60 = vmul.f32 %v2151_v59, %v851_v32 }
 0x85d   :  { %v874_v1 = vmul.f32 %v1752_v61, %v865_v60 }
 0x85e   :  { %v2153_v62 = vpop.eup %2152 }
 0x85f   :  { %v866_v63 = vmul.f32 %v2153_v62, %v852_v36  ;;  %v883_v4 = vadd.f32 %v1753_v2, %v874_v1 }
 0x861   :  { %v875_v3 = vmul.f32 %v1752_v61, %v866_v63 }
 0x863   :  { %v884_v5 = vadd.f32 %v1753_v2, %v875_v3 }
 0x865   :  { %v885_v6 = vpack.c.bf16 %v884_v5, %v883_v4 }
 0x867   :  { %1015 = vmatmul.mubr.bf16.vlgmr.msra.gmra.mxu0 %v885_v6 }
 0x868   :  { %1996 = vmatprep.mubr.msk.f32.mxu0 %vm2333_vm6, %v2332_v37 }
 0x927   :  { %v1016_v27 = vpop.f32.mrf.mxu0 }
 0x928   :  { %v1025_v28 = vmul.f32 %v1016_v27, %v1016_v27 }
 0x929   :  { %v1018_v29 = vpop.f32.mrf.mxu0 }
 0x92a   :  { %v1029_v31 = vmul.f32 %v1025_v28, %v1016_v27  ;;  %v1026_v32 = vmul.f32 %v1018_v29, %v1018_v29  ;;  %v2123_v28 = vld [vmem:[#allocation11 + $0x40] ss:$8 sps:$4 sm:$0xff]  }
 0x92b   :  { %v1020_v30 = vpop.f32.mrf.mxu0 }
 0x92c   :  { %v1033_v33 = vmul.f32 0.044715, %v1029_v31  ;;  %v1030_v35 = vmul.f32 %v1026_v32, %v1018_v29  ;;  %v1027_v36 = vmul.f32 %v1020_v30, %v1020_v30  ;;  %v2131_v31 = vld [vmem:[#allocation11 + $0x24] ss:$8 sps:$4 sm:$0xff]   ;;  %v2129_v32 = vld [vmem:[#allocation11 + $0x20] ss:$8 sps:$4 sm:$0xff]  }
 0x92d   :  { %v1022_v39 = vpop.f32.mrf.mxu0 }
 0x92e   :  { %v1037_v34 = vadd.f32 %v1033_v33, %v1016_v27  ;;  %v1034_v40 = vmul.f32 0.044715, %v1030_v35  ;;  %v1031_v42 = vmul.f32 %v1027_v36, %v1020_v30  ;;  %v1028_v43 = vmul.f32 %v1022_v39, %v1022_v39  ;;  %v2137_v33 = vld [vmem:[#allocation11 + $0x4] ss:$8 sps:$4 sm:$0xff]   ;;  %v2135_v35 = vld [vmem:[#allocation11] ss:$8 sps:$4 sm:$0xff]  }
 0x930   :  { %v1041_v44 = vmul.f32 0.7978846, %v1037_v34  ;;  %v1038_v19 = vadd.f32 %v1034_v40, %v1018_v29  ;;  %v1035_v45 = vmul.f32 0.044715, %v1031_v42  ;;  %v1032_v46 = vmul.f32 %v1028_v43, %v1022_v39  ;;  %v1328_v42 = vld [vmem:[%s2683_s13] sm:$0x3] }
 0x931   :  { %v1332_v40 = vsub.s32 0, %v2498_v38  ;;  %v1336_v43 = vsub.s32 1, %v2498_v38 }
 0x932   :  { %v1042_v47 = vmul.f32 0.7978846, %v1038_v19  ;;  %v1039_v48 = vadd.f32 %v1035_v45, %v1020_v30  ;;  %v1036_v49 = vmul.f32 0.044715, %v1032_v46  ;;  %2154 = vtanh.f32 %v1041_v44 }
 0x933   :  { %v1333_v44 = vrot.slane %v1328_v42, %v1332_v40  ;;  %v1337_v19 = vrot.slane %v1328_v42, %v1336_v43 }
 0x934   :  { %2156 = vtanh.f32 %v1042_v47  ;;  %v1043_v50 = vmul.f32 0.7978846, %v1039_v48  ;;  %v1040_v51 = vadd.f32 %v1036_v49, %v1022_v39 }
 0x936   :  { %2158 = vtanh.f32 %v1043_v50  ;;  %v1044_v52 = vmul.f32 0.7978846, %v1040_v51 }
 0x938   :  { %2160 = vtanh.f32 %v1044_v52 }
 0x93f   :  { %v2155_v53 = vpop.eup %2154 }
 0x940   :  { %v1049_v57 = vadd.f32 1.0, %v2155_v53 }
 0x941   :  { %v2157_v54 = vpop.eup %2156 }
 0x942   :  { %v1050_v55 = vadd.f32 1.0, %v2157_v54  ;;  %v1053_v63 = vmul.f32 0.5, %v1049_v57  ;;  %v2561_v54 = vld [vmem:[%s2671_s1] ss:$0 sm:$0xff]  ;;  %v1510_v57 = vadd.s32 240, %v2498_v38  ;;  %s2335_s1 = smov [#allocation13]  }
 0x943   :  { %v2159_v56 = vpop.eup %2158  ;;  %s1685_s13 = sshll.u32 %s2335_s1, 4  ;;  %s1686_s13 = int_to_ptr.vmem [resolvable:$true] %s1685_s13 }
 0x944   :  { %v1051_v58 = vadd.f32 1.0, %v2159_v56  ;;  %v1054_v60 = vmul.f32 0.5, %v1050_v55  ;;  %v1057_v5 = vmul.f32 %v1053_v63, %v1016_v27  ;;  %v2120_v27 = vld [vmem:[#allocation11 + $0x50] ss:$8 sps:$4 sm:$0xff]   ;;  %v1511_v55 = vadd.s32 248, %v2498_v38  ;;  %s2288_s25 = scalar_lea.vmem %s1686_s13, 32  ;;  %p2293_p3 = scmp.lt.s32.totalorder %s1686_s13, %s1686_s13 }
 0x945   :  { %v2161_v59 = vpop.eup %2160  ;;  %v1495_v56 = vadd.s32 120, %v2498_v38  ;;  %vm1546_vm2 = vcmp.eq.s32.totalorder %v1510_v57, %v2561_v54  ;;  %v1492_v63 = vadd.s32 96, %v2498_v38  ;;  %p2289_p2 = scmp.ne.s32.totalorder %s1686_s13, %s2288_s25  ;;  %p2294_p4 = scmp.lt.s32.totalorder %s2288_s25, %s2288_s25 }
 0x946   :  { %v1055_v61 = vmul.f32 0.5, %v1051_v58  ;;  %v1052_v62 = vadd.f32 1.0, %v2161_v59  ;;  %v1058_v3 = vmul.f32 %v1054_v60, %v1018_v29  ;;  %v2128_v29 = vld [vmem:[#allocation11 + $0x34] ss:$8 sps:$4 sm:$0xff]   ;;  %v1494_v58 = vadd.s32 112, %v2498_v38 }
 0x947   :  { %v1509_v59 = vadd.s32 232, %v2498_v38  ;;  %v1493_v60 = vadd.s32 104, %v2498_v38  ;;  %vm1547_vm0 = vcmp.eq.s32.totalorder %v1511_v55, %v2561_v54  ;;  %vm1531_vm1 = vcmp.eq.s32.totalorder %v1495_v56, %v2561_v54  ;;  %p2295_p5 = por %p2294_p4, %p2293_p3 }
 0x948   :  { %v1056_v1 = vmul.f32 0.5, %v1052_v62  ;;  %v1059_v2 = vmul.f32 %v1055_v61, %v1020_v30  ;;  %v2134_v30 = vld [vmem:[#allocation11 + $0x14] ss:$8 sps:$4 sm:$0xff]   ;;  %v1508_v61 = vadd.s32 224, %v2498_v38  ;;  %v2334_v62 = vmov 1.0  }
 0x949   :  { %1905 = vmatprep.subr.msk.mxu1 %vm1547_vm0, %v2334_v62  ;;  %vm1530_vm3 = vcmp.eq.s32.totalorder %v1494_v58, %v2561_v54  ;;  %vm1545_vm4 = vcmp.eq.s32.totalorder %v1509_v59, %v2561_v54  ;;  %vm1529_vm5 = vcmp.eq.s32.totalorder %v1493_v60, %v2561_v54  ;;  %vm1528_vm7 = vcmp.eq.s32.totalorder %v1492_v63, %v2561_v54  ;;  %p2296_p6 = pnand %p2295_p5, %p2289_p2 }
 0x94a   :  { %v1060_v4 = vmul.f32 %v1056_v1, %v1022_v39  ;;  %v1061_v7 = vpack.c.bf16 %v1059_v2, %v1057_v5  ;;  %v1507_v1 = vadd.s32 216, %v2498_v38  ;;  %v1491_v2 = vadd.s32 88, %v2498_v38 }
 0x94b   :  { %vm1544_vm6 = vcmp.eq.s32.totalorder %v1508_v61, %v2561_v54  ;;  %v1505_v5 = vadd.s32 200, %v2498_v38 }
 0x94c   :  { %v1062_v6 = vpack.c.bf16 %v1060_v4, %v1058_v3  ;;  %v1506_v3 = vadd.s32 208, %v2498_v38  ;;  %v1490_v4 = vadd.s32 80, %v2498_v38  ;;  %vm1543_vm8 = vcmp.eq.s32.totalorder %v1507_v1, %v2561_v54 }
 0x94d   :  { %vm1527_vm9 = vcmp.eq.s32.totalorder %v1491_v2, %v2561_v54  ;;  %vm1541_vm12 = vcmp.eq.s32.totalorder %v1505_v5, %v2561_v54 }
 0x94e   :  { %1223 = vmatprep.mubr.bf16.mxu1 %v1062_v6  ;;  %v1489_v6 = vadd.s32 72, %v2498_v38  ;;  %vm1526_vm11 = vcmp.eq.s32.totalorder %v1490_v4, %v2561_v54 }
 0x94f   :  { %1224 = vmatmul.mubr.bf16.vlgmr.msra.gmra.mxu1 %v1061_v7  ;;  %v1504_v7 = vadd.s32 192, %v2498_v38 }
 0x950   :  { %1906 = vmatpush3.msk.msra.mxu1 %vm1531_vm1, %v2334_v62  ;;  %vm1525_vm13 = vcmp.eq.s32.totalorder %v1489_v6, %v2561_v54 }
 0x951   :  { %1907 = vmatprep.subr.msk.mxu1 %vm1546_vm2, %v2334_v62  ;;  %vm1540_vm14 = vcmp.eq.s32.totalorder %v1504_v7, %v2561_v54 }
 0x952   :  { %1908 = vmatpush3.msk.msra.mxu1 %vm1530_vm3, %v2334_v62 }
 0x953   :  { %1909 = vmatprep.subr.msk.mxu1 %vm1545_vm4, %v2334_v62 }
 0x954   :  { %1910 = vmatpush3.msk.msra.mxu1 %vm1529_vm5, %v2334_v62 }
 0x955   :  { %1911 = vmatprep.subr.msk.mxu1 %vm1544_vm6, %v2334_v62 }
 0x956   :  { %1912 = vmatpush3.msk.msra.mxu1 %vm1528_vm7, %v2334_v62 }
 0x957   :  { %1913 = vmatprep.subr.msk.mxu1 %vm1543_vm8, %v2334_v62 }
 0x958   :  { %1914 = vmatpush3.msk.msra.mxu1 %vm1527_vm9, %v2334_v62 }
 0xa0f   :  { %v1896_v8 = vpop.f32.mrf.mxu1 }
 0xa11   :  { %v1897_v10 = vpop.f32.mrf.mxu1 }
 0xa12   :  { %v1898_v14 = vadd.f32 %v1897_v10, %v1896_v8 }
 0xa13   :  { %v1899_v11 = vpop.f32.mrf.mxu1 }
 0xa14   :  { %v1232_v18 = vadd.f32 %v1898_v14, %v2525_v22  ;;  %v2125_v22 = vld [vmem:[#allocation11 + $0x44] ss:$8 sps:$4 sm:$0xff]  }
 0xa15   :  { %v1900_v13 = vpop.f32.mrf.mxu1 }
 0xa16   :  { %v1901_v15 = vadd.f32 %v1900_v13, %v1899_v11 }
 0xa18   :  { %v1233_v16 = vadd.f32 %v1901_v15, %v2529_v25  ;;  %v2122_v25 = vld [vmem:[#allocation11 + $0x54] ss:$8 sps:$4 sm:$0xff]  }
 0xa1a   :  { %1993 = vmatpush3.msra.mxu0 %v1233_v16 }
 0xa1b   :  { %1994 = vmatprep.subr.mxu0 %v2332_v37  ;;  %v2126_v37 = vld [vmem:[#allocation11 + $0x30] ss:$8 sps:$4 sm:$0xff]  }
 0xa1c   :  { %1995 = vmatpush3.msra.mxu0 %v1232_v18  ;;  %v1488_v18 = vadd.s32 64, %v2498_v38 }
 0xa1d   :  { %1997 = vmatmul.mubr.msk.f32.vlgmr.msra.gmra.mxu0 %vm668_vm10, %v1237_v21  ;;  %1420 = vmatprep.subr.bf16.mxu0 %v2116_v17  ;;  %vm1542_vm10 = vcmp.eq.s32.totalorder %v1506_v3, %v2561_v54  ;;  %v1503_v21 = vadd.s32 184, %v2498_v38 }
 0xa1e   :  { %1421 = vmatpush1.bf16.msra.mxu0 %v2114_v23  ;;  %1452 = vmatprep.mubr.bf16.mxu0 %v2330_v0  ;;  %v2132_v0 = vld [vmem:[#allocation11 + $0x10] ss:$8 sps:$4 sm:$0xff]   ;;  %vm1524_vm0 = vcmp.eq.s32.totalorder %v1488_v18, %v2561_v54  ;;  %v1487_v23 = vadd.s32 56, %v2498_v38 }
 0xa1f   :  { %1422 = vmatprep.subr.bf16.mxu0 %v2119_v24  ;;  %1915 = vmatprep.subr.msk.mxu1 %vm1542_vm10, %v2334_v62  ;;  %vm1539_vm1 = vcmp.eq.s32.totalorder %v1503_v21, %v2561_v54  ;;  %v1502_v24 = vadd.s32 176, %v2498_v38 }
 0xa20   :  { %1916 = vmatpush3.msk.msra.mxu1 %vm1526_vm11, %v2334_v62  ;;  %vm1523_vm2 = vcmp.eq.s32.totalorder %v1487_v23, %v2561_v54 }
 0xa21   :  { %1917 = vmatprep.subr.msk.mxu1 %vm1541_vm12, %v2334_v62  ;;  %vm1538_vm3 = vcmp.eq.s32.totalorder %v1502_v24, %v2561_v54 }
 0xa22   :  { %1423 = vmatpush1.bf16.msra.mxu0 %v2117_v26  ;;  %1918 = vmatpush3.msk.msra.mxu1 %vm1525_vm13, %v2334_v62  ;;  %v1486_v26 = vadd.s32 48, %v2498_v38 }
 0xa23   :  { %1424 = vmatprep.subr.bf16.mxu0 %v2122_v25  ;;  %1919 = vmatprep.subr.msk.mxu1 %vm1540_vm14, %v2334_v62  ;;  %v1501_v25 = vadd.s32 168, %v2498_v38  ;;  %vm1517_vm14 = vcmp.eq.s32.totalorder %v2503_v41, %v2561_v54 }
 0xa24   :  { %1920 = vmatpush3.msk.msra.mxu1 %vm1524_vm0, %v2334_v62  ;;  %vm1522_vm4 = vcmp.eq.s32.totalorder %v1486_v26, %v2561_v54 }
 0xa25   :  { %1921 = vmatprep.subr.msk.mxu1 %vm1539_vm1, %v2334_v62  ;;  %vm1537_vm5 = vcmp.eq.s32.totalorder %v1501_v25, %v2561_v54  ;;  %vm1516_vm1 = vcmp.eq.s32.totalorder %v2498_v38, %v2561_v54 }
 0xa26   :  { %1425 = vmatpush1.bf16.msra.mxu0 %v2120_v27  ;;  %v1485_v27 = vadd.s32 40, %v2498_v38  ;;  %1922 = vmatpush3.msk.msra.mxu1 %vm1523_vm2, %v2334_v62  ;;  %vm1650_vm2 = vcmp.lt.s32.totalorder %v2444_v20, 6 }
 0xa27   :  { %1426 = vmatprep.subr.bf16.mxu0 %v2125_v22  ;;  %v1500_v22 = vadd.s32 160, %v2498_v38  ;;  %1923 = vmatprep.subr.msk.mxu1 %vm1538_vm3, %v2334_v62 }
 0xa28   :  { %vm1521_vm6 = vcmp.eq.s32.totalorder %v1485_v27, %v2561_v54  ;;  %1924 = vmatpush3.msk.msra.mxu1 %vm1522_vm4, %v2334_v62 }
 0xa29   :  { %vm1536_vm7 = vcmp.eq.s32.totalorder %v1500_v22, %v2561_v54  ;;  %1925 = vmatprep.subr.msk.mxu1 %vm1537_vm5, %v2334_v62  ;;  %vm1673_vm5 = vcmp.eq.s32.totalorder %v2444_v20, 126 }
 0xa2a   :  { %1427 = vmatpush1.bf16.msra.mxu0 %v2123_v28  ;;  %v1484_v28 = vadd.s32 32, %v2498_v38  ;;  %1926 = vmatpush3.msk.msra.mxu1 %vm1521_vm6, %v2334_v62 }
 0xa2b   :  { %1428 = vmatprep.subr.bf16.mxu0 %v2128_v29  ;;  %v1499_v29 = vadd.s32 152, %v2498_v38  ;;  %1927 = vmatprep.subr.msk.mxu1 %vm1536_vm7, %v2334_v62 }
 0xa2c   :  { %vm1520_vm8 = vcmp.eq.s32.totalorder %v1484_v28, %v2561_v54 }
 0xa2d   :  { %vm1535_vm9 = vcmp.eq.s32.totalorder %v1499_v29, %v2561_v54  ;;  %1928 = vmatpush3.msk.msra.mxu1 %vm1520_vm8, %v2334_v62 }
 0xa2e   :  { %1429 = vmatpush1.bf16.msra.mxu0 %v2126_v37  ;;  %v1483_v37 = vadd.s32 24, %v2498_v38  ;;  %1929 = vmatprep.subr.msk.mxu1 %vm1535_vm9, %v2334_v62 }
 0xa2f   :  { %1430 = vmatprep.subr.bf16.mxu0 %v2131_v31  ;;  %v1498_v31 = vadd.s32 144, %v2498_v38 }
 0xa30   :  { %vm1519_vm10 = vcmp.eq.s32.totalorder %v1483_v37, %v2561_v54 }
 0xa31   :  { %vm1534_vm11 = vcmp.eq.s32.totalorder %v1498_v31, %v2561_v54  ;;  %1930 = vmatpush3.msk.msra.mxu1 %vm1519_vm10, %v2334_v62 }
 0xa32   :  { %1431 = vmatpush1.bf16.msra.mxu0 %v2129_v32  ;;  %v1482_v32 = vadd.s32 16, %v2498_v38  ;;  %1931 = vmatprep.subr.msk.mxu1 %vm1534_vm11, %v2334_v62 }
 0xa33   :  { %1432 = vmatprep.subr.bf16.mxu0 %v2134_v30  ;;  %v1497_v30 = vadd.s32 136, %v2498_v38 }
 0xa34   :  { %vm1518_vm12 = vcmp.eq.s32.totalorder %v1482_v32, %v2561_v54 }
 0xa35   :  { %vm1533_vm13 = vcmp.eq.s32.totalorder %v1497_v30, %v2561_v54  ;;  %1932 = vmatpush3.msk.msra.mxu1 %vm1518_vm12, %v2334_v62 }
 0xa36   :  { %1433 = vmatpush1.bf16.msra.mxu0 %v2132_v0  ;;  %v1496_v0 = vadd.s32 128, %v2498_v38  ;;  %1933 = vmatprep.subr.msk.mxu1 %vm1533_vm13, %v2334_v62 }
 0xa37   :  { %1434 = vmatprep.subr.bf16.mxu0 %v2137_v33  ;;  %1934 = vmatpush3.msk.msra.mxu1 %vm1517_vm14, %v2334_v62 }
 0xa38   :  { %vm1532_vm0 = vcmp.eq.s32.totalorder %v1496_v0, %v2561_v54 }
 0xa39   :  { %1935 = vmatprep.subr.msk.mxu1 %vm1532_vm0, %v2334_v62 }
 0xa3a   :  { %1435 = vmatpush1.bf16.msra.mxu0 %v2135_v35  ;;  %1936 = vmatpush3.msk.msra.mxu1 %vm1516_vm1, %v2334_v62 }
 0xadd   :  { %v1307_v36 = vpop.f32.mrf.mxu0 }
 0xade   :  { %v1311_v39 = vpack.c.bf16 %v1307_v36, %v1307_v36 }
 0xadf   :  { %v1998_v34 = vpop.f32.mrf.mxu0 }
 0xae0   :  { %1453 = vmatmul.mubr.bf16.vlgmr.msra.gmra.mxu0 %v1311_v39 }
 0xba0   :  { %v1454_v45 = vpop.f32.mrf.mxu0 }
 0xba1   :  { %v1455_v46 = vadd.f32 %v1454_v45, %v1333_v44 }
 0xba2   :  { %v1456_v47 = vpop.f32.mrf.mxu0 }
 0xba3   :  { %v1457_v48 = vadd.f32 %v1456_v47, %v1337_v19  ;;  %v1462_v50 = vsel %vm1461_vm15, %v1455_v46, -inf }
 0xba4   :  { %v1458_v49 = vpop.f32.mrf.mxu0 }
 0xba5   :  { %v1463_v51 = vsel %vm1461_vm15, %v1457_v48, -inf }
 0xba6   :  { %v1459_v52 = vpop.f32.mrf.mxu0  ;;  %v1464_v53 = vmax.f32 %v1462_v50, %v1463_v51 }
 0xba8   :  { %1465 = vmax.xlane.f32.xlu1 %v1464_v53 }
 0xc31   :  { %v1466_v8 = vpop.xlane.xlu1 %1465 }
 0xc32   :  { %v1467_v9 = vsub.f32 %v1455_v46, %v1466_v8  ;;  %v1468_v10 = vsub.f32 %v1457_v48, %v1466_v8 }
 0xc34   :  { %v1469_v11 = vmul.f32 1.442695, %v1467_v9  ;;  %v1471_v12 = vmul.f32 1.442695, %v1468_v10 }
 0xc36   :  { %2162 = vpow2.f32 %v1469_v11 }
 0xc37   :  { %2164 = vpow2.f32 %v1471_v12 }
 0xc43   :  { %v2163_v13 = vpop.eup %2162 }
 0xc44   :  { %v2165_v14 = vpop.eup %2164  ;;  %v1473_v15 = vsel %vm1461_vm15, %v2163_v13, 0.0 }
 0xc45   :  { %v1474_v16 = vsel %vm1461_vm15, %v2165_v14, 0.0 }
 0xc46   :  { %v1475_v17 = vadd.f32 %v1474_v16, %v1473_v15 }
 0xc48   :  { %1476 = vadd.xlane.f32.xlu0 %v1475_v17 }
 0xcd1   :  { %v1477_v33 = vpop.xlane.xlu0 %1476 }
 0xcd2   :  { %2166 = vrcp.f32 %v1477_v33 }
 0xcdf   :  { %v2167_v35 = vpop.eup %2166 }
 0xce0   :  { %v1480_v36 = vmul.f32 %v2167_v35, %v2165_v14  ;;  %v1479_v41 = vmul.f32 %v2167_v35, %v2163_v13 }
 0xce2   :  { %1644 = vmatprep.mubr.f32.mxu1 %v1480_v36 }
 0xce3   :  { %1645 = vmatmul.mubr.f32.vlgmr.msra.gmra.mxu1 %v1479_v41 }
 0xda3   :  { %v1937_v39 = vpop.f32.mrf.mxu1 }
 0xda5   :  { %v1938_v34 = vpop.f32.mrf.mxu1 }
 0xda6   :  { %v1939_v40 = vadd.f32 %v1938_v34, %v1937_v39 }
 0xda8   :  { %v1672_v42 = vsel %vm1650_vm2, %v1939_v40, 0.0  ;;  %v1651_v38 = vsel %vm1650_vm2, %v1939_v40, -1.0 }
 0xda9   :  { %v1652_v43 = vsel %vm1461_vm15, %v1651_v38, -inf }
 0xdaa   :  { %1653 = vmax.xlane.f32.xlu1 %v1652_v43 }
 0xe33   :  { %v1654_v44 = vpop.xlane.xlu1 %1653 }
 0xe34   :  { %vm1655_vm3 = vcmp.ge.f32.partialorder %v1651_v38, %v1654_v44  ;;  %v1674_v58 = vsel %vm1673_vm5, %v1654_v44, %v1672_v42 }
 0xe35   :  { %v1656_v19 = vsel %vm1655_vm3, %v2444_v20, 1073741824 }
 0xe36   :  { %v1657_v45 = vsel %vm1461_vm15, %v1656_v19, 2147483647  ;;  %vm1675_vm15 = vcmp.eq.s32.totalorder %v2444_v20, 127 }
 0xe37   :  { %v1659_v46 = vshra.s32 %v1657_v45, 16  ;;  %v1658_v48 = vand.u32 65535, %v1657_v45 }
 0xe39   :  { %v1661_v47 = vcvt.s32.f32 %v1659_v46  ;;  %v1660_v50 = vcvt.s32.f32 %v1658_v48 }
 0xe3b   :  { %1662 = vmin.xlane.f32.xlu0 %v1661_v47 }
 0xec4   :  { %v1663_v49 = vpop.xlane.xlu0 %1662 }
 0xec5   :  { %vm1664_vm4 = vcmp.eq.f32.partialorder %v1661_v47, %v1663_v49  ;;  %v1669_v52 = vcvt.f32.s32 %v1663_v49 }
 0xec6   :  { %v1665_v51 = vsel %vm1664_vm4, %v1660_v50, inf }
 0xec7   :  { %1666 = vmin.xlane.f32.xlu1 %v1665_v51  ;;  %v1670_v54 = vshll.u32 %v1669_v52, 16 }
 0xf50   :  { %v1667_v53 = vpop.xlane.xlu1 %1666 }
 0xf51   :  { %v1668_v55 = vcvt.f32.s32 %v1667_v53 }
 0xf53   :  { %v1671_v56 = vadd.s32 %v1670_v54, %v1668_v55 }
 0xf55   :  { %v1676_v57 = vcvt.s32.f32 %v1671_v56 }
 0xf57   :  { %v1677_v59 = vsel %vm1675_vm15, %v1676_v57, %v1674_v58 }
 0xf58   :  { %1678 = vst [vmem:[#allocation13] sm:$0x3] %v1677_v59 }
 0xf59   :  { %2299 = shalt.err (!%p2296_p6)
}
 0xf5a   :  { %1688 = dma.vmem_to_hbm [thread:$0]  %s1686_s13, 32, %s2684_s14, [#allocation4]  }
 0xf5b   :  { %2316 = dma.done.wait [#allocation4], 32  }
 0xf5c   :  { %2317 = vsyncadd [#allocation4], 4294967264 }
 0xf5d   :  { %1692 = vsyncpa [#allocation3], 1 }
 0xf5e   :  { %1693 = vsyncpa [#allocation6], 1 }
 0xf5f   :  { %1694 = vsyncpa [#allocation9], 1 }
 0xf60   :  { %1695 = vsyncpa [#allocation12], 1 }
 0xf61   :  { %1696 = vsyncpa [#allocation4], 1 }

</bundles_post_ra>
